<compile_context>
chip_gen: v6e
topology: v6e:2x2x1
jax: 0.10.0
libtpu: 0.0.40
codegen_flags: <defaults>
</compile_context>

<pallas_src>
import functools

import jax
import jax.numpy as jnp
from jax.experimental import pallas as pl
from jax.experimental.pallas import tpu as pltpu


def _mha_kernel(q_ref, k_ref, v_ref, wq_ref, wk_ref, wv_ref, wc_ref, bc_ref,
                o_ref, cat_ref, *, red_dim, groups, mask):
    """One grid step: all cities/heads of a (TB, L, C*E) batch slab."""
    TB, L, CE = q_ref.shape
    R, G = red_dim, groups
    N = TB * L
    mm_dtype = wq_ref.dtype            # matmul operand dtype (f32, or bf16 on v6e/v7x)

    xq = q_ref[...].reshape(N, CE).astype(mm_dtype)
    xk = k_ref[...].reshape(N, CE).astype(mm_dtype)
    xv = v_ref[...].reshape(N, CE).astype(mm_dtype)

    # Lane-dense projections: single (TB*L, C*E) @ (C*E, C*E) MXU ops; weights are
    # pre-transposed + block-diagonal per city, and 1/sqrt(R) is folded into wq.
    q = jnp.dot(xq, wq_ref[...], preferred_element_type=jnp.float32)
    k = jnp.dot(xk, wk_ref[...], preferred_element_type=jnp.float32)
    v = jnp.dot(xv, wv_ref[...], preferred_element_type=jnp.float32)

    # Rearrange ONCE to the head-batched layout (G*TB, L, R); all (city, head) groups
    # then go through a single scores einsum, a single softmax and a single PV einsum.
    # TODO(synk): replace the lane slices + stack with one lane-splitting
    #             reshape/einshape once Mosaic supports that shape_cast.
    def split_heads(x):                # (N, CE) -> (G*TB, L, R)
        pieces = [x[:, g * R:(g + 1) * R].reshape(TB, L, R) for g in range(G)]
        return jnp.stack(pieces, axis=0).reshape(G * TB, L, R)

    qb = split_heads(q).astype(mm_dtype)
    kb = split_heads(k).astype(mm_dtype)
    vb = split_heads(v).astype(mm_dtype)

    s = jnp.einsum('bld,bmd->blm', qb, kb,
                   preferred_element_type=jnp.float32)          # (G*TB, L, L)
    if mask:
        # Additive causal mask built once per grid step (hoisted; no -inf NaN hazard).
        row = jax.lax.broadcasted_iota(jnp.int32, (L, L), 0)
        col = jax.lax.broadcasted_iota(jnp.int32, (L, L), 1)
        s = s + jnp.where(col > row, jnp.float32(-1e30), jnp.float32(0.0))[None, :, :]

    # Numerically stable, EXACT softmax (matches torch.softmax).
    s = s - jnp.max(s, axis=-1, keepdims=True)
    p = jnp.exp(s)
    p = p / jnp.sum(p, axis=-1, keepdims=True)

    o = jnp.einsum('blm,bmd->bld', p.astype(mm_dtype), vb,
                   preferred_element_type=jnp.float32)           # (G*TB, L, R)

    # Stream each group's result into the lane-dense concat slab in VMEM scratch
    # (bounds live ranges; avoids a G-way live concatenate).
    o4 = o.reshape(G, TB, L, R)
    for g in range(G):
        cat_ref[:, g * R:(g + 1) * R] = o4[g].reshape(N, R)

    out = jnp.dot(cat_ref[...].astype(mm_dtype), wc_ref[...],
                  preferred_element_type=jnp.float32) + bc_ref[...]
    o_ref[...] = out.reshape(TB, L, CE).astype(o_ref.dtype)


def multi_head_attention(values, queries, keys, wq, wk, wv, wc, bc, *, heads,
                         mask=False, batch_block=None, matmul_dtype=None):
    """values, queries, keys: [B, L, C, E]  ->  [B, L, C, E]."""
    B, L, C, E = values.shape
    assert E % heads == 0
    R = E // heads
    CE = C * E
    G = C * heads
    scale = 1.0 / float(R) ** 0.5

    # Free (metadata-only) reshapes; no HBM transpose passes in the wrapper.
    q_f = queries.reshape(B, L, CE)
    k_f = keys.reshape(B, L, CE)
    v_f = values.reshape(B, L, CE)

    # Matmul operand dtype: keep the input dtype by default (tight parity with torch);
    # pass jnp.bfloat16 on v6e/v7x for higher MXU throughput (f32 accumulation always).
    w_dtype = jnp.dtype(values.dtype) if matmul_dtype is None else jnp.dtype(matmul_dtype)

    # One-time weight prep (outside the kernel): transpose (nn.Linear: y = x @ W.T),
    # fold the attention scale into w_q, and replicate block-diagonally per city so the
    # in-kernel projections are lane-dense (CE x CE) matmuls with no in-kernel `.T`.
    # Scaling guard: if C*E grows past the MXU width (128 v5e / 256 v6e+), tile the
    # block-diagonal over groups of cities instead of one (CE, CE) block.
    eye_c = jnp.eye(C, dtype=jnp.float32)
    wq_bd = jnp.kron(eye_c, (wq.astype(jnp.float32) * scale).T).astype(w_dtype)
    wk_bd = jnp.kron(eye_c, wk.astype(jnp.float32).T).astype(w_dtype)
    wv_bd = jnp.kron(eye_c, wv.astype(jnp.float32).T).astype(w_dtype)
    wc_bd = jnp.kron(eye_c, wc.astype(jnp.float32).T).astype(w_dtype)
    bc_t = jnp.tile(bc.astype(jnp.float32), C).reshape(1, CE)

    # VMEM budget derived from the actual chip (64 MiB/TC on v7x, 128 MiB on v5e/v6e).
    try:
        vmem_cap = pltpu.get_tpu_info().vmem_capacity_bytes
    except Exception:                                  # conservative if query unavailable
        vmem_cap = 64 * 1024 * 1024
    vmem_limit = min(int(0.6 * vmem_cap), 96 * 1024 * 1024)   # ~38 MiB v7x, ~77 MiB v5e/v6e

    if batch_block is None:
        itemsize = jnp.dtype(values.dtype).itemsize
        blk = L * CE                                   # elements in one batch-row slab
        # Real VMEM footprint per unit of TB:
        #   (3 inputs + 1 output) streams x 2 pipeline buffers of the I/O block, plus
        #   in-kernel f32 temporaries (projected q/k/v, concat slab + out ~ 5 slabs,
        #   head-batched q/k/v/scores/probs/PV at ~128/R lane padding).
        pad = max(1, 128 // max(R, 1))
        per_tb = 8 * blk * itemsize + (5 * blk + 6 * blk * pad) * 4
        weight_bytes = 4 * CE * CE * w_dtype.itemsize + CE * 4
        budget = max(0, int(0.8 * vmem_limit) - weight_bytes)
        tb_vmem = max(1, budget // per_tb)
        tb_rows = max(1, -(-256 // L))                 # >=256 rows/step to fill MXU M dim
        tb_cap = min(B, int(tb_vmem), tb_rows)
        if B >= 2:
            tb_cap = min(tb_cap, max(1, B // 2))       # >=2 grid steps -> both TCs (v7x)
        TB = max(d for d in range(1, tb_cap + 1) if B % d == 0)
    else:
        TB = batch_block
        assert B % TB == 0

    kernel = functools.partial(_mha_kernel, red_dim=R, groups=G, mask=mask)

    seq_spec = pl.BlockSpec((TB, L, CE), lambda i: (i, 0, 0))
    w_spec = pl.BlockSpec((CE, CE), lambda i: (0, 0))
    b_spec = pl.BlockSpec((1, CE), lambda i: (0, 0))

    out_flat = pl.pallas_call(
        kernel,
        out_shape=jax.ShapeDtypeStruct((B, L, CE), values.dtype),
        grid_spec=pltpu.PrefetchScalarGridSpec(
            num_scalar_prefetch=0,
            grid=(B // TB,),
            in_specs=[seq_spec, seq_spec, seq_spec,
                      w_spec, w_spec, w_spec, w_spec, b_spec],
            out_specs=seq_spec,
            scratch_shapes=[pltpu.VMEM((TB * L, CE), jnp.float32)],
        ),
        compiler_params=pltpu.CompilerParams(
            dimension_semantics=("parallel",),
            vmem_limit_bytes=int(vmem_limit),
        ),
    )(q_f, k_f, v_f, wq_bd, wk_bd, wv_bd, wc_bd, bc_t)

    return out_flat.reshape(B, L, C, E)


def _reference(values, queries, keys, wq, wk, wv, wc, bc, *, heads, mask=False):
    """Pure-JAX reference mirroring the PyTorch forward."""
    B, L, C, E = values.shape
    R = E // heads
    scale = 1.0 / float(R) ** 0.5

    def flat(x):
        return jnp.transpose(x, (0, 2, 1, 3)).reshape(B * C, L, E)

    v_f, q_f, k_f = flat(values), flat(queries), flat(keys)
    q = (q_f @ wq.T).reshape(B * C, L, heads, R).transpose(0, 2, 1, 3)
    k = (k_f @ wk.T).reshape(B * C, L, heads, R).transpose(0, 2, 1, 3)
    v = (v_f @ wv.T).reshape(B * C, L, heads, R).transpose(0, 2, 1, 3)
    s = jnp.einsum("bhld,bhmd->bhlm", q, k) * scale
    if mask:
        row = jnp.arange(L)[:, None]
        col = jnp.arange(L)[None, :]
        s = jnp.where(col > row, -jnp.inf, s)
    p = jax.nn.softmax(s, axis=-1)
    o = jnp.einsum("bhlm,bhmd->bhld", p, v)
    o = o.transpose(0, 2, 1, 3).reshape(B * C, L, E) @ wc.T + bc
    return jnp.transpose(o.reshape(B, C, L, E), (0, 2, 1, 3))


if __name__ == "__main__":
    B, L, C, E, H = 2, 8, 4, 32, 4   # batch, hist_len, city_num, emb_dim, heads

    key = jax.random.PRNGKey(0)
    ks = jax.random.split(key, 8)
    values = jax.random.normal(ks[0], (B, L, C, E), dtype=jnp.float32)
    queries = jax.random.normal(ks[1], (B, L, C, E), dtype=jnp.float32)
    keys = jax.random.normal(ks[2], (B, L, C, E), dtype=jnp.float32)

    winit = 1.0 / (E ** 0.5)         # nn.Linear-style uniform init
    wq = jax.random.uniform(ks[3], (E, E), jnp.float32, -winit, winit)
    wk = jax.random.uniform(ks[4], (E, E), jnp.float32, -winit, winit)
    wv = jax.random.uniform(ks[5], (E, E), jnp.float32, -winit, winit)
    wc = jax.random.uniform(ks[6], (E, E), jnp.float32, -winit, winit)
    bc = jax.random.uniform(ks[7], (E,), jnp.float32, -winit, winit)

    # Exact (f32) path -- matches the PyTorch forward.
    for m in (False, True):
        out = multi_head_attention(values, queries, keys, wq, wk, wv, wc, bc,
                                   heads=H, mask=m)
        out = jax.block_until_ready(out)
        ref = _reference(values, queries, keys, wq, wk, wv, wc, bc, heads=H, mask=m)
        assert out.shape == (B, L, C, E)
        assert jnp.allclose(out, ref, atol=5e-3, rtol=5e-3), f"mismatch vs ref (mask={m})"

    # bf16 MXU-operand path (v6e/v7x roofline lever); f32 accumulation, looser tol.
    out_bf16 = multi_head_attention(values, queries, keys, wq, wk, wv, wc, bc,
                                    heads=H, mask=True, matmul_dtype=jnp.bfloat16)
    out_bf16 = jax.block_until_ready(out_bf16)
    ref_m = _reference(values, queries, keys, wq, wk, wv, wc, bc, heads=H, mask=True)
    assert jnp.allclose(out_bf16, ref_m, atol=1e-1, rtol=1e-1), "bf16 path mismatch"

    print("KERNEL_OK")
</pallas_src>

<mosaic_0001>
module attributes {stable_mosaic.version = 11 : i64} {
  func.func @_mha_kernel(%arg0: i32, %arg1: memref<1x8x128xf32, #tpu.memory_space<vmem>>, %arg2: memref<1x8x128xf32, #tpu.memory_space<vmem>>, %arg3: memref<1x8x128xf32, #tpu.memory_space<vmem>>, %arg4: memref<128x128xf32, #tpu.memory_space<vmem>>, %arg5: memref<128x128xf32, #tpu.memory_space<vmem>>, %arg6: memref<128x128xf32, #tpu.memory_space<vmem>>, %arg7: memref<128x128xf32, #tpu.memory_space<vmem>>, %arg8: memref<1x128xf32, #tpu.memory_space<vmem>>, %arg9: memref<1x8x128xf32, #tpu.memory_space<vmem>>, %arg10: memref<8x128xf32, #tpu.memory_space<vmem>>) attributes {dimension_semantics = [#tpu.dimension_semantics<parallel>], iteration_bounds = array<i64: 2>, scalar_prefetch = 0 : i64, scratch_operands = 1 : i64, tpu.core_type = #tpu.core_type<tc>, window_params = [{transform_indices = @transform_0, window_bounds = array<i64: 1, 8, 128>}, {transform_indices = @transform_1, window_bounds = array<i64: 1, 8, 128>}, {transform_indices = @transform_2, window_bounds = array<i64: 1, 8, 128>}, {pipeline_mode = #tpu.pipeline_mode<synchronous>, transform_indices = @transform_3, window_bounds = array<i64: 128, 128>}, {pipeline_mode = #tpu.pipeline_mode<synchronous>, transform_indices = @transform_4, window_bounds = array<i64: 128, 128>}, {pipeline_mode = #tpu.pipeline_mode<synchronous>, transform_indices = @transform_5, window_bounds = array<i64: 128, 128>}, {pipeline_mode = #tpu.pipeline_mode<synchronous>, transform_indices = @transform_6, window_bounds = array<i64: 128, 128>}, {pipeline_mode = #tpu.pipeline_mode<synchronous>, transform_indices = @transform_7, window_bounds = array<i64: 1, 128>}, {transform_indices = @transform_8, window_bounds = array<i64: 1, 8, 128>}]} {
    %c0 = arith.constant 0 : index
    %c0_0 = arith.constant 0 : index
    %c0_1 = arith.constant 0 : index
    %0 = vector.load %arg1[%c0, %c0_0, %c0_1] : memref<1x8x128xf32, #tpu.memory_space<vmem>>, vector<1x8x128xf32>
    %1 = vector.shape_cast %0 : vector<1x8x128xf32> to vector<8x128xf32>
    %c0_2 = arith.constant 0 : index
    %c0_3 = arith.constant 0 : index
    %c0_4 = arith.constant 0 : index
    %2 = vector.load %arg2[%c0_2, %c0_3, %c0_4] : memref<1x8x128xf32, #tpu.memory_space<vmem>>, vector<1x8x128xf32>
    %3 = vector.shape_cast %2 : vector<1x8x128xf32> to vector<8x128xf32>
    %c0_5 = arith.constant 0 : index
    %c0_6 = arith.constant 0 : index
    %c0_7 = arith.constant 0 : index
    %4 = vector.load %arg3[%c0_5, %c0_6, %c0_7] : memref<1x8x128xf32, #tpu.memory_space<vmem>>, vector<1x8x128xf32>
    %5 = vector.shape_cast %4 : vector<1x8x128xf32> to vector<8x128xf32>
    %c0_8 = arith.constant 0 : index
    %c0_9 = arith.constant 0 : index
    %6 = vector.load %arg4[%c0_8, %c0_9] : memref<128x128xf32, #tpu.memory_space<vmem>>, vector<128x128xf32>
    %cst = arith.constant dense<0.000000e+00> : vector<8x128xf32>
    %7 = tpu.matmul %1, %6, %cst {dimension_numbers = #tpu.dot_dimension_numbers<[1], [0], [0], [1], [0, 0, 1, 1], [], []>} : vector<8x128xf32>, vector<128x128xf32>, vector<8x128xf32> -> vector<8x128xf32>
    %c0_10 = arith.constant 0 : index
    %c0_11 = arith.constant 0 : index
    %8 = vector.load %arg5[%c0_10, %c0_11] : memref<128x128xf32, #tpu.memory_space<vmem>>, vector<128x128xf32>
    %cst_12 = arith.constant dense<0.000000e+00> : vector<8x128xf32>
    %9 = tpu.matmul %3, %8, %cst_12 {dimension_numbers = #tpu.dot_dimension_numbers<[1], [0], [0], [1], [0, 0, 1, 1], [], []>} : vector<8x128xf32>, vector<128x128xf32>, vector<8x128xf32> -> vector<8x128xf32>
    %c0_13 = arith.constant 0 : index
    %c0_14 = arith.constant 0 : index
    %10 = vector.load %arg6[%c0_13, %c0_14] : memref<128x128xf32, #tpu.memory_space<vmem>>, vector<128x128xf32>
    %cst_15 = arith.constant dense<0.000000e+00> : vector<8x128xf32>
    %11 = tpu.matmul %5, %10, %cst_15 {dimension_numbers = #tpu.dot_dimension_numbers<[1], [0], [0], [1], [0, 0, 1, 1], [], []>} : vector<8x128xf32>, vector<128x128xf32>, vector<8x128xf32> -> vector<8x128xf32>
    %12 = vector.extract_strided_slice %7 {offsets = [0, 0], sizes = [8, 8], strides = [1, 1]} : vector<8x128xf32> to vector<8x8xf32>
    %13 = vector.shape_cast %12 : vector<8x8xf32> to vector<1x8x8xf32>
    %14 = vector.extract_strided_slice %7 {offsets = [0, 8], sizes = [8, 8], strides = [1, 1]} : vector<8x128xf32> to vector<8x8xf32>
    %15 = vector.shape_cast %14 : vector<8x8xf32> to vector<1x8x8xf32>
    %16 = vector.extract_strided_slice %7 {offsets = [0, 16], sizes = [8, 8], strides = [1, 1]} : vector<8x128xf32> to vector<8x8xf32>
    %17 = vector.shape_cast %16 : vector<8x8xf32> to vector<1x8x8xf32>
    %18 = vector.extract_strided_slice %7 {offsets = [0, 24], sizes = [8, 8], strides = [1, 1]} : vector<8x128xf32> to vector<8x8xf32>
    %19 = vector.shape_cast %18 : vector<8x8xf32> to vector<1x8x8xf32>
    %20 = vector.extract_strided_slice %7 {offsets = [0, 32], sizes = [8, 8], strides = [1, 1]} : vector<8x128xf32> to vector<8x8xf32>
    %21 = vector.shape_cast %20 : vector<8x8xf32> to vector<1x8x8xf32>
    %22 = vector.extract_strided_slice %7 {offsets = [0, 40], sizes = [8, 8], strides = [1, 1]} : vector<8x128xf32> to vector<8x8xf32>
    %23 = vector.shape_cast %22 : vector<8x8xf32> to vector<1x8x8xf32>
    %24 = vector.extract_strided_slice %7 {offsets = [0, 48], sizes = [8, 8], strides = [1, 1]} : vector<8x128xf32> to vector<8x8xf32>
    %25 = vector.shape_cast %24 : vector<8x8xf32> to vector<1x8x8xf32>
    %26 = vector.extract_strided_slice %7 {offsets = [0, 56], sizes = [8, 8], strides = [1, 1]} : vector<8x128xf32> to vector<8x8xf32>
    %27 = vector.shape_cast %26 : vector<8x8xf32> to vector<1x8x8xf32>
    %28 = vector.extract_strided_slice %7 {offsets = [0, 64], sizes = [8, 8], strides = [1, 1]} : vector<8x128xf32> to vector<8x8xf32>
    %29 = vector.shape_cast %28 : vector<8x8xf32> to vector<1x8x8xf32>
    %30 = vector.extract_strided_slice %7 {offsets = [0, 72], sizes = [8, 8], strides = [1, 1]} : vector<8x128xf32> to vector<8x8xf32>
    %31 = vector.shape_cast %30 : vector<8x8xf32> to vector<1x8x8xf32>
    %32 = vector.extract_strided_slice %7 {offsets = [0, 80], sizes = [8, 8], strides = [1, 1]} : vector<8x128xf32> to vector<8x8xf32>
    %33 = vector.shape_cast %32 : vector<8x8xf32> to vector<1x8x8xf32>
    %34 = vector.extract_strided_slice %7 {offsets = [0, 88], sizes = [8, 8], strides = [1, 1]} : vector<8x128xf32> to vector<8x8xf32>
    %35 = vector.shape_cast %34 : vector<8x8xf32> to vector<1x8x8xf32>
    %36 = vector.extract_strided_slice %7 {offsets = [0, 96], sizes = [8, 8], strides = [1, 1]} : vector<8x128xf32> to vector<8x8xf32>
    %37 = vector.shape_cast %36 : vector<8x8xf32> to vector<1x8x8xf32>
    %38 = vector.extract_strided_slice %7 {offsets = [0, 104], sizes = [8, 8], strides = [1, 1]} : vector<8x128xf32> to vector<8x8xf32>
    %39 = vector.shape_cast %38 : vector<8x8xf32> to vector<1x8x8xf32>
    %40 = vector.extract_strided_slice %7 {offsets = [0, 112], sizes = [8, 8], strides = [1, 1]} : vector<8x128xf32> to vector<8x8xf32>
    %41 = vector.shape_cast %40 : vector<8x8xf32> to vector<1x8x8xf32>
    %42 = vector.extract_strided_slice %7 {offsets = [0, 120], sizes = [8, 8], strides = [1, 1]} : vector<8x128xf32> to vector<8x8xf32>
    %43 = vector.shape_cast %42 : vector<8x8xf32> to vector<1x8x8xf32>
    %44 = vector.shape_cast %13 : vector<1x8x8xf32> to vector<1x1x8x8xf32>
    %45 = vector.shape_cast %15 : vector<1x8x8xf32> to vector<1x1x8x8xf32>
    %46 = vector.shape_cast %17 : vector<1x8x8xf32> to vector<1x1x8x8xf32>
    %47 = vector.shape_cast %19 : vector<1x8x8xf32> to vector<1x1x8x8xf32>
    %48 = vector.shape_cast %21 : vector<1x8x8xf32> to vector<1x1x8x8xf32>
    %49 = vector.shape_cast %23 : vector<1x8x8xf32> to vector<1x1x8x8xf32>
    %50 = vector.shape_cast %25 : vector<1x8x8xf32> to vector<1x1x8x8xf32>
    %51 = vector.shape_cast %27 : vector<1x8x8xf32> to vector<1x1x8x8xf32>
    %52 = vector.shape_cast %29 : vector<1x8x8xf32> to vector<1x1x8x8xf32>
    %53 = vector.shape_cast %31 : vector<1x8x8xf32> to vector<1x1x8x8xf32>
    %54 = vector.shape_cast %33 : vector<1x8x8xf32> to vector<1x1x8x8xf32>
    %55 = vector.shape_cast %35 : vector<1x8x8xf32> to vector<1x1x8x8xf32>
    %56 = vector.shape_cast %37 : vector<1x8x8xf32> to vector<1x1x8x8xf32>
    %57 = vector.shape_cast %39 : vector<1x8x8xf32> to vector<1x1x8x8xf32>
    %58 = vector.shape_cast %41 : vector<1x8x8xf32> to vector<1x1x8x8xf32>
    %59 = vector.shape_cast %43 : vector<1x8x8xf32> to vector<1x1x8x8xf32>
    %60 = tpu.concatenate %44, %45, %46, %47, %48, %49, %50, %51, %52, %53, %54, %55, %56, %57, %58, %59 in 0 : vector<1x1x8x8xf32>, vector<1x1x8x8xf32>, vector<1x1x8x8xf32>, vector<1x1x8x8xf32>, vector<1x1x8x8xf32>, vector<1x1x8x8xf32>, vector<1x1x8x8xf32>, vector<1x1x8x8xf32>, vector<1x1x8x8xf32>, vector<1x1x8x8xf32>, vector<1x1x8x8xf32>, vector<1x1x8x8xf32>, vector<1x1x8x8xf32>, vector<1x1x8x8xf32>, vector<1x1x8x8xf32>, vector<1x1x8x8xf32> -> vector<16x1x8x8xf32>
    %61 = vector.shape_cast %60 : vector<16x1x8x8xf32> to vector<16x8x8xf32>
    %62 = vector.extract_strided_slice %9 {offsets = [0, 0], sizes = [8, 8], strides = [1, 1]} : vector<8x128xf32> to vector<8x8xf32>
    %63 = vector.shape_cast %62 : vector<8x8xf32> to vector<1x8x8xf32>
    %64 = vector.extract_strided_slice %9 {offsets = [0, 8], sizes = [8, 8], strides = [1, 1]} : vector<8x128xf32> to vector<8x8xf32>
    %65 = vector.shape_cast %64 : vector<8x8xf32> to vector<1x8x8xf32>
    %66 = vector.extract_strided_slice %9 {offsets = [0, 16], sizes = [8, 8], strides = [1, 1]} : vector<8x128xf32> to vector<8x8xf32>
    %67 = vector.shape_cast %66 : vector<8x8xf32> to vector<1x8x8xf32>
    %68 = vector.extract_strided_slice %9 {offsets = [0, 24], sizes = [8, 8], strides = [1, 1]} : vector<8x128xf32> to vector<8x8xf32>
    %69 = vector.shape_cast %68 : vector<8x8xf32> to vector<1x8x8xf32>
    %70 = vector.extract_strided_slice %9 {offsets = [0, 32], sizes = [8, 8], strides = [1, 1]} : vector<8x128xf32> to vector<8x8xf32>
    %71 = vector.shape_cast %70 : vector<8x8xf32> to vector<1x8x8xf32>
    %72 = vector.extract_strided_slice %9 {offsets = [0, 40], sizes = [8, 8], strides = [1, 1]} : vector<8x128xf32> to vector<8x8xf32>
    %73 = vector.shape_cast %72 : vector<8x8xf32> to vector<1x8x8xf32>
    %74 = vector.extract_strided_slice %9 {offsets = [0, 48], sizes = [8, 8], strides = [1, 1]} : vector<8x128xf32> to vector<8x8xf32>
    %75 = vector.shape_cast %74 : vector<8x8xf32> to vector<1x8x8xf32>
    %76 = vector.extract_strided_slice %9 {offsets = [0, 56], sizes = [8, 8], strides = [1, 1]} : vector<8x128xf32> to vector<8x8xf32>
    %77 = vector.shape_cast %76 : vector<8x8xf32> to vector<1x8x8xf32>
    %78 = vector.extract_strided_slice %9 {offsets = [0, 64], sizes = [8, 8], strides = [1, 1]} : vector<8x128xf32> to vector<8x8xf32>
    %79 = vector.shape_cast %78 : vector<8x8xf32> to vector<1x8x8xf32>
    %80 = vector.extract_strided_slice %9 {offsets = [0, 72], sizes = [8, 8], strides = [1, 1]} : vector<8x128xf32> to vector<8x8xf32>
    %81 = vector.shape_cast %80 : vector<8x8xf32> to vector<1x8x8xf32>
    %82 = vector.extract_strided_slice %9 {offsets = [0, 80], sizes = [8, 8], strides = [1, 1]} : vector<8x128xf32> to vector<8x8xf32>
    %83 = vector.shape_cast %82 : vector<8x8xf32> to vector<1x8x8xf32>
    %84 = vector.extract_strided_slice %9 {offsets = [0, 88], sizes = [8, 8], strides = [1, 1]} : vector<8x128xf32> to vector<8x8xf32>
    %85 = vector.shape_cast %84 : vector<8x8xf32> to vector<1x8x8xf32>
    %86 = vector.extract_strided_slice %9 {offsets = [0, 96], sizes = [8, 8], strides = [1, 1]} : vector<8x128xf32> to vector<8x8xf32>
    %87 = vector.shape_cast %86 : vector<8x8xf32> to vector<1x8x8xf32>
    %88 = vector.extract_strided_slice %9 {offsets = [0, 104], sizes = [8, 8], strides = [1, 1]} : vector<8x128xf32> to vector<8x8xf32>
    %89 = vector.shape_cast %88 : vector<8x8xf32> to vector<1x8x8xf32>
    %90 = vector.extract_strided_slice %9 {offsets = [0, 112], sizes = [8, 8], strides = [1, 1]} : vector<8x128xf32> to vector<8x8xf32>
    %91 = vector.shape_cast %90 : vector<8x8xf32> to vector<1x8x8xf32>
    %92 = vector.extract_strided_slice %9 {offsets = [0, 120], sizes = [8, 8], strides = [1, 1]} : vector<8x128xf32> to vector<8x8xf32>
    %93 = vector.shape_cast %92 : vector<8x8xf32> to vector<1x8x8xf32>
    %94 = vector.shape_cast %63 : vector<1x8x8xf32> to vector<1x1x8x8xf32>
    %95 = vector.shape_cast %65 : vector<1x8x8xf32> to vector<1x1x8x8xf32>
    %96 = vector.shape_cast %67 : vector<1x8x8xf32> to vector<1x1x8x8xf32>
    %97 = vector.shape_cast %69 : vector<1x8x8xf32> to vector<1x1x8x8xf32>
    %98 = vector.shape_cast %71 : vector<1x8x8xf32> to vector<1x1x8x8xf32>
    %99 = vector.shape_cast %73 : vector<1x8x8xf32> to vector<1x1x8x8xf32>
    %100 = vector.shape_cast %75 : vector<1x8x8xf32> to vector<1x1x8x8xf32>
    %101 = vector.shape_cast %77 : vector<1x8x8xf32> to vector<1x1x8x8xf32>
    %102 = vector.shape_cast %79 : vector<1x8x8xf32> to vector<1x1x8x8xf32>
    %103 = vector.shape_cast %81 : vector<1x8x8xf32> to vector<1x1x8x8xf32>
    %104 = vector.shape_cast %83 : vector<1x8x8xf32> to vector<1x1x8x8xf32>
    %105 = vector.shape_cast %85 : vector<1x8x8xf32> to vector<1x1x8x8xf32>
    %106 = vector.shape_cast %87 : vector<1x8x8xf32> to vector<1x1x8x8xf32>
    %107 = vector.shape_cast %89 : vector<1x8x8xf32> to vector<1x1x8x8xf32>
    %108 = vector.shape_cast %91 : vector<1x8x8xf32> to vector<1x1x8x8xf32>
    %109 = vector.shape_cast %93 : vector<1x8x8xf32> to vector<1x1x8x8xf32>
    %110 = tpu.concatenate %94, %95, %96, %97, %98, %99, %100, %101, %102, %103, %104, %105, %106, %107, %108, %109 in 0 : vector<1x1x8x8xf32>, vector<1x1x8x8xf32>, vector<1x1x8x8xf32>, vector<1x1x8x8xf32>, vector<1x1x8x8xf32>, vector<1x1x8x8xf32>, vector<1x1x8x8xf32>, vector<1x1x8x8xf32>, vector<1x1x8x8xf32>, vector<1x1x8x8xf32>, vector<1x1x8x8xf32>, vector<1x1x8x8xf32>, vector<1x1x8x8xf32>, vector<1x1x8x8xf32>, vector<1x1x8x8xf32>, vector<1x1x8x8xf32> -> vector<16x1x8x8xf32>
    %111 = vector.shape_cast %110 : vector<16x1x8x8xf32> to vector<16x8x8xf32>
    %112 = vector.extract_strided_slice %11 {offsets = [0, 0], sizes = [8, 8], strides = [1, 1]} : vector<8x128xf32> to vector<8x8xf32>
    %113 = vector.shape_cast %112 : vector<8x8xf32> to vector<1x8x8xf32>
    %114 = vector.extract_strided_slice %11 {offsets = [0, 8], sizes = [8, 8], strides = [1, 1]} : vector<8x128xf32> to vector<8x8xf32>
    %115 = vector.shape_cast %114 : vector<8x8xf32> to vector<1x8x8xf32>
    %116 = vector.extract_strided_slice %11 {offsets = [0, 16], sizes = [8, 8], strides = [1, 1]} : vector<8x128xf32> to vector<8x8xf32>
    %117 = vector.shape_cast %116 : vector<8x8xf32> to vector<1x8x8xf32>
    %118 = vector.extract_strided_slice %11 {offsets = [0, 24], sizes = [8, 8], strides = [1, 1]} : vector<8x128xf32> to vector<8x8xf32>
    %119 = vector.shape_cast %118 : vector<8x8xf32> to vector<1x8x8xf32>
    %120 = vector.extract_strided_slice %11 {offsets = [0, 32], sizes = [8, 8], strides = [1, 1]} : vector<8x128xf32> to vector<8x8xf32>
    %121 = vector.shape_cast %120 : vector<8x8xf32> to vector<1x8x8xf32>
    %122 = vector.extract_strided_slice %11 {offsets = [0, 40], sizes = [8, 8], strides = [1, 1]} : vector<8x128xf32> to vector<8x8xf32>
    %123 = vector.shape_cast %122 : vector<8x8xf32> to vector<1x8x8xf32>
    %124 = vector.extract_strided_slice %11 {offsets = [0, 48], sizes = [8, 8], strides = [1, 1]} : vector<8x128xf32> to vector<8x8xf32>
    %125 = vector.shape_cast %124 : vector<8x8xf32> to vector<1x8x8xf32>
    %126 = vector.extract_strided_slice %11 {offsets = [0, 56], sizes = [8, 8], strides = [1, 1]} : vector<8x128xf32> to vector<8x8xf32>
    %127 = vector.shape_cast %126 : vector<8x8xf32> to vector<1x8x8xf32>
    %128 = vector.extract_strided_slice %11 {offsets = [0, 64], sizes = [8, 8], strides = [1, 1]} : vector<8x128xf32> to vector<8x8xf32>
    %129 = vector.shape_cast %128 : vector<8x8xf32> to vector<1x8x8xf32>
    %130 = vector.extract_strided_slice %11 {offsets = [0, 72], sizes = [8, 8], strides = [1, 1]} : vector<8x128xf32> to vector<8x8xf32>
    %131 = vector.shape_cast %130 : vector<8x8xf32> to vector<1x8x8xf32>
    %132 = vector.extract_strided_slice %11 {offsets = [0, 80], sizes = [8, 8], strides = [1, 1]} : vector<8x128xf32> to vector<8x8xf32>
    %133 = vector.shape_cast %132 : vector<8x8xf32> to vector<1x8x8xf32>
    %134 = vector.extract_strided_slice %11 {offsets = [0, 88], sizes = [8, 8], strides = [1, 1]} : vector<8x128xf32> to vector<8x8xf32>
    %135 = vector.shape_cast %134 : vector<8x8xf32> to vector<1x8x8xf32>
    %136 = vector.extract_strided_slice %11 {offsets = [0, 96], sizes = [8, 8], strides = [1, 1]} : vector<8x128xf32> to vector<8x8xf32>
    %137 = vector.shape_cast %136 : vector<8x8xf32> to vector<1x8x8xf32>
    %138 = vector.extract_strided_slice %11 {offsets = [0, 104], sizes = [8, 8], strides = [1, 1]} : vector<8x128xf32> to vector<8x8xf32>
    %139 = vector.shape_cast %138 : vector<8x8xf32> to vector<1x8x8xf32>
    %140 = vector.extract_strided_slice %11 {offsets = [0, 112], sizes = [8, 8], strides = [1, 1]} : vector<8x128xf32> to vector<8x8xf32>
    %141 = vector.shape_cast %140 : vector<8x8xf32> to vector<1x8x8xf32>
    %142 = vector.extract_strided_slice %11 {offsets = [0, 120], sizes = [8, 8], strides = [1, 1]} : vector<8x128xf32> to vector<8x8xf32>
    %143 = vector.shape_cast %142 : vector<8x8xf32> to vector<1x8x8xf32>
    %144 = vector.shape_cast %113 : vector<1x8x8xf32> to vector<1x1x8x8xf32>
    %145 = vector.shape_cast %115 : vector<1x8x8xf32> to vector<1x1x8x8xf32>
    %146 = vector.shape_cast %117 : vector<1x8x8xf32> to vector<1x1x8x8xf32>
    %147 = vector.shape_cast %119 : vector<1x8x8xf32> to vector<1x1x8x8xf32>
    %148 = vector.shape_cast %121 : vector<1x8x8xf32> to vector<1x1x8x8xf32>
    %149 = vector.shape_cast %123 : vector<1x8x8xf32> to vector<1x1x8x8xf32>
    %150 = vector.shape_cast %125 : vector<1x8x8xf32> to vector<1x1x8x8xf32>
    %151 = vector.shape_cast %127 : vector<1x8x8xf32> to vector<1x1x8x8xf32>
    %152 = vector.shape_cast %129 : vector<1x8x8xf32> to vector<1x1x8x8xf32>
    %153 = vector.shape_cast %131 : vector<1x8x8xf32> to vector<1x1x8x8xf32>
    %154 = vector.shape_cast %133 : vector<1x8x8xf32> to vector<1x1x8x8xf32>
    %155 = vector.shape_cast %135 : vector<1x8x8xf32> to vector<1x1x8x8xf32>
    %156 = vector.shape_cast %137 : vector<1x8x8xf32> to vector<1x1x8x8xf32>
    %157 = vector.shape_cast %139 : vector<1x8x8xf32> to vector<1x1x8x8xf32>
    %158 = vector.shape_cast %141 : vector<1x8x8xf32> to vector<1x1x8x8xf32>
    %159 = vector.shape_cast %143 : vector<1x8x8xf32> to vector<1x1x8x8xf32>
    %160 = tpu.concatenate %144, %145, %146, %147, %148, %149, %150, %151, %152, %153, %154, %155, %156, %157, %158, %159 in 0 : vector<1x1x8x8xf32>, vector<1x1x8x8xf32>, vector<1x1x8x8xf32>, vector<1x1x8x8xf32>, vector<1x1x8x8xf32>, vector<1x1x8x8xf32>, vector<1x1x8x8xf32>, vector<1x1x8x8xf32>, vector<1x1x8x8xf32>, vector<1x1x8x8xf32>, vector<1x1x8x8xf32>, vector<1x1x8x8xf32>, vector<1x1x8x8xf32>, vector<1x1x8x8xf32>, vector<1x1x8x8xf32>, vector<1x1x8x8xf32> -> vector<16x1x8x8xf32>
    %161 = vector.shape_cast %160 : vector<16x1x8x8xf32> to vector<16x8x8xf32>
    "tpu.trace_start"() <{level = 10 : i32, message = "bld,bmd->blm"}> : () -> ()
    %cst_16 = arith.constant dense<0.000000e+00> : vector<16x8x8xf32>
    %162 = tpu.matmul %61, %111, %cst_16 {dimension_numbers = #tpu.dot_dimension_numbers<[2], [2], [1], [1], [0, 0, 0, 1, 1, 1], [0], [0]>} : vector<16x8x8xf32>, vector<16x8x8xf32>, vector<16x8x8xf32> -> vector<16x8x8xf32>
    "tpu.trace_stop"() : () -> ()
    %cst_17 = arith.constant dense<0xFF800000> : vector<16x8xf32>
    %163 = vector.multi_reduction <maximumf>, %162, %cst_17 [2] : vector<16x8x8xf32> to vector<16x8xf32>
    %164 = vector.shape_cast %163 : vector<16x8xf32> to vector<16x8x1xf32>
    %165 = vector.broadcast %164 : vector<16x8x1xf32> to vector<16x8x8xf32>
    %166 = arith.subf %162, %165 : vector<16x8x8xf32>
    %167 = math.exp %166 : vector<16x8x8xf32>
    %cst_18 = arith.constant dense<0.000000e+00> : vector<16x8xf32>
    %168 = vector.multi_reduction <add>, %167, %cst_18 [2] : vector<16x8x8xf32> to vector<16x8xf32>
    %169 = vector.shape_cast %168 : vector<16x8xf32> to vector<16x8x1xf32>
    %170 = vector.broadcast %169 : vector<16x8x1xf32> to vector<16x8x8xf32>
    %171 = arith.divf %167, %170 : vector<16x8x8xf32>
    "tpu.trace_start"() <{level = 10 : i32, message = "blm,bmd->bld"}> : () -> ()
    %cst_19 = arith.constant dense<0.000000e+00> : vector<16x8x8xf32>
    %172 = tpu.matmul %171, %161, %cst_19 {dimension_numbers = #tpu.dot_dimension_numbers<[2], [1], [1], [2], [0, 0, 0, 1, 1, 2], [0], [0]>} : vector<16x8x8xf32>, vector<16x8x8xf32>, vector<16x8x8xf32> -> vector<16x8x8xf32>
    "tpu.trace_stop"() : () -> ()
    %173 = vector.shape_cast %172 : vector<16x8x8xf32> to vector<16x1x8x8xf32>
    %174 = vector.extract_strided_slice %173 {offsets = [0, 0, 0, 0], sizes = [1, 1, 8, 8], strides = [1, 1, 1, 1]} : vector<16x1x8x8xf32> to vector<1x1x8x8xf32>
    %175 = vector.shape_cast %174 : vector<1x1x8x8xf32> to vector<1x8x8xf32>
    %176 = vector.shape_cast %175 : vector<1x8x8xf32> to vector<8x8xf32>
    %c0_20 = arith.constant 0 : index
    %c0_21 = arith.constant 0 : index
    %177 = vector.load %arg10[%c0_20, %c0_21] : memref<8x128xf32, #tpu.memory_space<vmem>>, vector<8x8xf32>
    tpu.vector_store %arg10[%c0_20, %c0_21], %176 {strides = array<i32>} : memref<8x128xf32, #tpu.memory_space<vmem>>, vector<8x8xf32>,
    %178 = vector.extract_strided_slice %173 {offsets = [1, 0, 0, 0], sizes = [1, 1, 8, 8], strides = [1, 1, 1, 1]} : vector<16x1x8x8xf32> to vector<1x1x8x8xf32>
    %179 = vector.shape_cast %178 : vector<1x1x8x8xf32> to vector<1x8x8xf32>
    %180 = vector.shape_cast %179 : vector<1x8x8xf32> to vector<8x8xf32>
    %c0_22 = arith.constant 0 : index
    %c8 = arith.constant 8 : index
    %181 = vector.load %arg10[%c0_22, %c8] : memref<8x128xf32, #tpu.memory_space<vmem>>, vector<8x8xf32>
    tpu.vector_store %arg10[%c0_22, %c8], %180 {strides = array<i32>} : memref<8x128xf32, #tpu.memory_space<vmem>>, vector<8x8xf32>,
    %182 = vector.extract_strided_slice %173 {offsets = [2, 0, 0, 0], sizes = [1, 1, 8, 8], strides = [1, 1, 1, 1]} : vector<16x1x8x8xf32> to vector<1x1x8x8xf32>
    %183 = vector.shape_cast %182 : vector<1x1x8x8xf32> to vector<1x8x8xf32>
    %184 = vector.shape_cast %183 : vector<1x8x8xf32> to vector<8x8xf32>
    %c0_23 = arith.constant 0 : index
    %c16 = arith.constant 16 : index
    %185 = vector.load %arg10[%c0_23, %c16] : memref<8x128xf32, #tpu.memory_space<vmem>>, vector<8x8xf32>
    tpu.vector_store %arg10[%c0_23, %c16], %184 {strides = array<i32>} : memref<8x128xf32, #tpu.memory_space<vmem>>, vector<8x8xf32>,
    %186 = vector.extract_strided_slice %173 {offsets = [3, 0, 0, 0], sizes = [1, 1, 8, 8], strides = [1, 1, 1, 1]} : vector<16x1x8x8xf32> to vector<1x1x8x8xf32>
    %187 = vector.shape_cast %186 : vector<1x1x8x8xf32> to vector<1x8x8xf32>
    %188 = vector.shape_cast %187 : vector<1x8x8xf32> to vector<8x8xf32>
    %c0_24 = arith.constant 0 : index
    %c24 = arith.constant 24 : index
    %189 = vector.load %arg10[%c0_24, %c24] : memref<8x128xf32, #tpu.memory_space<vmem>>, vector<8x8xf32>
    tpu.vector_store %arg10[%c0_24, %c24], %188 {strides = array<i32>} : memref<8x128xf32, #tpu.memory_space<vmem>>, vector<8x8xf32>,
    %190 = vector.extract_strided_slice %173 {offsets = [4, 0, 0, 0], sizes = [1, 1, 8, 8], strides = [1, 1, 1, 1]} : vector<16x1x8x8xf32> to vector<1x1x8x8xf32>
    %191 = vector.shape_cast %190 : vector<1x1x8x8xf32> to vector<1x8x8xf32>
    %192 = vector.shape_cast %191 : vector<1x8x8xf32> to vector<8x8xf32>
    %c0_25 = arith.constant 0 : index
    %c32 = arith.constant 32 : index
    %193 = vector.load %arg10[%c0_25, %c32] : memref<8x128xf32, #tpu.memory_space<vmem>>, vector<8x8xf32>
    tpu.vector_store %arg10[%c0_25, %c32], %192 {strides = array<i32>} : memref<8x128xf32, #tpu.memory_space<vmem>>, vector<8x8xf32>,
    %194 = vector.extract_strided_slice %173 {offsets = [5, 0, 0, 0], sizes = [1, 1, 8, 8], strides = [1, 1, 1, 1]} : vector<16x1x8x8xf32> to vector<1x1x8x8xf32>
    %195 = vector.shape_cast %194 : vector<1x1x8x8xf32> to vector<1x8x8xf32>
    %196 = vector.shape_cast %195 : vector<1x8x8xf32> to vector<8x8xf32>
    %c0_26 = arith.constant 0 : index
    %c40 = arith.constant 40 : index
    %197 = vector.load %arg10[%c0_26, %c40] : memref<8x128xf32, #tpu.memory_space<vmem>>, vector<8x8xf32>
    tpu.vector_store %arg10[%c0_26, %c40], %196 {strides = array<i32>} : memref<8x128xf32, #tpu.memory_space<vmem>>, vector<8x8xf32>,
    %198 = vector.extract_strided_slice %173 {offsets = [6, 0, 0, 0], sizes = [1, 1, 8, 8], strides = [1, 1, 1, 1]} : vector<16x1x8x8xf32> to vector<1x1x8x8xf32>
    %199 = vector.shape_cast %198 : vector<1x1x8x8xf32> to vector<1x8x8xf32>
    %200 = vector.shape_cast %199 : vector<1x8x8xf32> to vector<8x8xf32>
    %c0_27 = arith.constant 0 : index
    %c48 = arith.constant 48 : index
    %201 = vector.load %arg10[%c0_27, %c48] : memref<8x128xf32, #tpu.memory_space<vmem>>, vector<8x8xf32>
    tpu.vector_store %arg10[%c0_27, %c48], %200 {strides = array<i32>} : memref<8x128xf32, #tpu.memory_space<vmem>>, vector<8x8xf32>,
    %202 = vector.extract_strided_slice %173 {offsets = [7, 0, 0, 0], sizes = [1, 1, 8, 8], strides = [1, 1, 1, 1]} : vector<16x1x8x8xf32> to vector<1x1x8x8xf32>
    %203 = vector.shape_cast %202 : vector<1x1x8x8xf32> to vector<1x8x8xf32>
    %204 = vector.shape_cast %203 : vector<1x8x8xf32> to vector<8x8xf32>
    %c0_28 = arith.constant 0 : index
    %c56 = arith.constant 56 : index
    %205 = vector.load %arg10[%c0_28, %c56] : memref<8x128xf32, #tpu.memory_space<vmem>>, vector<8x8xf32>
    tpu.vector_store %arg10[%c0_28, %c56], %204 {strides = array<i32>} : memref<8x128xf32, #tpu.memory_space<vmem>>, vector<8x8xf32>,
    %206 = vector.extract_strided_slice %173 {offsets = [8, 0, 0, 0], sizes = [1, 1, 8, 8], strides = [1, 1, 1, 1]} : vector<16x1x8x8xf32> to vector<1x1x8x8xf32>
    %207 = vector.shape_cast %206 : vector<1x1x8x8xf32> to vector<1x8x8xf32>
    %208 = vector.shape_cast %207 : vector<1x8x8xf32> to vector<8x8xf32>
    %c0_29 = arith.constant 0 : index
    %c64 = arith.constant 64 : index
    %209 = vector.load %arg10[%c0_29, %c64] : memref<8x128xf32, #tpu.memory_space<vmem>>, vector<8x8xf32>
    tpu.vector_store %arg10[%c0_29, %c64], %208 {strides = array<i32>} : memref<8x128xf32, #tpu.memory_space<vmem>>, vector<8x8xf32>,
    %210 = vector.extract_strided_slice %173 {offsets = [9, 0, 0, 0], sizes = [1, 1, 8, 8], strides = [1, 1, 1, 1]} : vector<16x1x8x8xf32> to vector<1x1x8x8xf32>
    %211 = vector.shape_cast %210 : vector<1x1x8x8xf32> to vector<1x8x8xf32>
    %212 = vector.shape_cast %211 : vector<1x8x8xf32> to vector<8x8xf32>
    %c0_30 = arith.constant 0 : index
    %c72 = arith.constant 72 : index
    %213 = vector.load %arg10[%c0_30, %c72] : memref<8x128xf32, #tpu.memory_space<vmem>>, vector<8x8xf32>
    tpu.vector_store %arg10[%c0_30, %c72], %212 {strides = array<i32>} : memref<8x128xf32, #tpu.memory_space<vmem>>, vector<8x8xf32>,
    %214 = vector.extract_strided_slice %173 {offsets = [10, 0, 0, 0], sizes = [1, 1, 8, 8], strides = [1, 1, 1, 1]} : vector<16x1x8x8xf32> to vector<1x1x8x8xf32>
    %215 = vector.shape_cast %214 : vector<1x1x8x8xf32> to vector<1x8x8xf32>
    %216 = vector.shape_cast %215 : vector<1x8x8xf32> to vector<8x8xf32>
    %c0_31 = arith.constant 0 : index
    %c80 = arith.constant 80 : index
    %217 = vector.load %arg10[%c0_31, %c80] : memref<8x128xf32, #tpu.memory_space<vmem>>, vector<8x8xf32>
    tpu.vector_store %arg10[%c0_31, %c80], %216 {strides = array<i32>} : memref<8x128xf32, #tpu.memory_space<vmem>>, vector<8x8xf32>,
    %218 = vector.extract_strided_slice %173 {offsets = [11, 0, 0, 0], sizes = [1, 1, 8, 8], strides = [1, 1, 1, 1]} : vector<16x1x8x8xf32> to vector<1x1x8x8xf32>
    %219 = vector.shape_cast %218 : vector<1x1x8x8xf32> to vector<1x8x8xf32>
    %220 = vector.shape_cast %219 : vector<1x8x8xf32> to vector<8x8xf32>
    %c0_32 = arith.constant 0 : index
    %c88 = arith.constant 88 : index
    %221 = vector.load %arg10[%c0_32, %c88] : memref<8x128xf32, #tpu.memory_space<vmem>>, vector<8x8xf32>
    tpu.vector_store %arg10[%c0_32, %c88], %220 {strides = array<i32>} : memref<8x128xf32, #tpu.memory_space<vmem>>, vector<8x8xf32>,
    %222 = vector.extract_strided_slice %173 {offsets = [12, 0, 0, 0], sizes = [1, 1, 8, 8], strides = [1, 1, 1, 1]} : vector<16x1x8x8xf32> to vector<1x1x8x8xf32>
    %223 = vector.shape_cast %222 : vector<1x1x8x8xf32> to vector<1x8x8xf32>
    %224 = vector.shape_cast %223 : vector<1x8x8xf32> to vector<8x8xf32>
    %c0_33 = arith.constant 0 : index
    %c96 = arith.constant 96 : index
    %225 = vector.load %arg10[%c0_33, %c96] : memref<8x128xf32, #tpu.memory_space<vmem>>, vector<8x8xf32>
    tpu.vector_store %arg10[%c0_33, %c96], %224 {strides = array<i32>} : memref<8x128xf32, #tpu.memory_space<vmem>>, vector<8x8xf32>,
    %226 = vector.extract_strided_slice %173 {offsets = [13, 0, 0, 0], sizes = [1, 1, 8, 8], strides = [1, 1, 1, 1]} : vector<16x1x8x8xf32> to vector<1x1x8x8xf32>
    %227 = vector.shape_cast %226 : vector<1x1x8x8xf32> to vector<1x8x8xf32>
    %228 = vector.shape_cast %227 : vector<1x8x8xf32> to vector<8x8xf32>
    %c0_34 = arith.constant 0 : index
    %c104 = arith.constant 104 : index
    %229 = vector.load %arg10[%c0_34, %c104] : memref<8x128xf32, #tpu.memory_space<vmem>>, vector<8x8xf32>
    tpu.vector_store %arg10[%c0_34, %c104], %228 {strides = array<i32>} : memref<8x128xf32, #tpu.memory_space<vmem>>, vector<8x8xf32>,
    %230 = vector.extract_strided_slice %173 {offsets = [14, 0, 0, 0], sizes = [1, 1, 8, 8], strides = [1, 1, 1, 1]} : vector<16x1x8x8xf32> to vector<1x1x8x8xf32>
    %231 = vector.shape_cast %230 : vector<1x1x8x8xf32> to vector<1x8x8xf32>
    %232 = vector.shape_cast %231 : vector<1x8x8xf32> to vector<8x8xf32>
    %c0_35 = arith.constant 0 : index
    %c112 = arith.constant 112 : index
    %233 = vector.load %arg10[%c0_35, %c112] : memref<8x128xf32, #tpu.memory_space<vmem>>, vector<8x8xf32>
    tpu.vector_store %arg10[%c0_35, %c112], %232 {strides = array<i32>} : memref<8x128xf32, #tpu.memory_space<vmem>>, vector<8x8xf32>,
    %234 = vector.extract_strided_slice %173 {offsets = [15, 0, 0, 0], sizes = [1, 1, 8, 8], strides = [1, 1, 1, 1]} : vector<16x1x8x8xf32> to vector<1x1x8x8xf32>
    %235 = vector.shape_cast %234 : vector<1x1x8x8xf32> to vector<1x8x8xf32>
    %236 = vector.shape_cast %235 : vector<1x8x8xf32> to vector<8x8xf32>
    %c0_36 = arith.constant 0 : index
    %c120 = arith.constant 120 : index
    %237 = vector.load %arg10[%c0_36, %c120] : memref<8x128xf32, #tpu.memory_space<vmem>>, vector<8x8xf32>
    tpu.vector_store %arg10[%c0_36, %c120], %236 {strides = array<i32>} : memref<8x128xf32, #tpu.memory_space<vmem>>, vector<8x8xf32>,
    %c0_37 = arith.constant 0 : index
    %c0_38 = arith.constant 0 : index
    %238 = vector.load %arg10[%c0_37, %c0_38] : memref<8x128xf32, #tpu.memory_space<vmem>>, vector<8x128xf32>
    %c0_39 = arith.constant 0 : index
    %c0_40 = arith.constant 0 : index
    %239 = vector.load %arg7[%c0_39, %c0_40] : memref<128x128xf32, #tpu.memory_space<vmem>>, vector<128x128xf32>
    %cst_41 = arith.constant dense<0.000000e+00> : vector<8x128xf32>
    %240 = tpu.matmul %238, %239, %cst_41 {dimension_numbers = #tpu.dot_dimension_numbers<[1], [0], [0], [1], [0, 0, 1, 1], [], []>} : vector<8x128xf32>, vector<128x128xf32>, vector<8x128xf32> -> vector<8x128xf32>
    %c0_42 = arith.constant 0 : index
    %c0_43 = arith.constant 0 : index
    %241 = vector.load %arg8[%c0_42, %c0_43] : memref<1x128xf32, #tpu.memory_space<vmem>>, vector<1x128xf32>
    %242 = vector.broadcast %241 : vector<1x128xf32> to vector<8x128xf32>
    %243 = arith.addf %240, %242 : vector<8x128xf32>
    %244 = vector.shape_cast %243 : vector<8x128xf32> to vector<1x8x128xf32>
    %c0_44 = arith.constant 0 : index
    %c0_45 = arith.constant 0 : index
    %c0_46 = arith.constant 0 : index
    %245 = vector.load %arg9[%c0_44, %c0_45, %c0_46] : memref<1x8x128xf32, #tpu.memory_space<vmem>>, vector<1x8x128xf32>
    tpu.vector_store %arg9[%c0_44, %c0_45, %c0_46], %244 {strides = array<i32>} : memref<1x8x128xf32, #tpu.memory_space<vmem>>, vector<1x8x128xf32>,
    return
  }
  func.func @transform_0(%arg0: i32) -> (i32, i32, i32) {
    %c0_i32 = arith.constant 0 : i32
    %c0_i32_0 = arith.constant 0 : i32
    %c0_i32_1 = arith.constant 0 : i32
    return %arg0, %c0_i32, %c0_i32_0 : i32, i32, i32
  }
  func.func @transform_1(%arg0: i32) -> (i32, i32, i32) {
    %c0_i32 = arith.constant 0 : i32
    %c0_i32_0 = arith.constant 0 : i32
    %c0_i32_1 = arith.constant 0 : i32
    return %arg0, %c0_i32, %c0_i32_0 : i32, i32, i32
  }
  func.func @transform_2(%arg0: i32) -> (i32, i32, i32) {
    %c0_i32 = arith.constant 0 : i32
    %c0_i32_0 = arith.constant 0 : i32
    %c0_i32_1 = arith.constant 0 : i32
    return %arg0, %c0_i32, %c0_i32_0 : i32, i32, i32
  }
  func.func @transform_3(%arg0: i32) -> (i32, i32) {
    %c0_i32 = arith.constant 0 : i32
    %c0_i32_0 = arith.constant 0 : i32
    %c0_i32_1 = arith.constant 0 : i32
    return %c0_i32, %c0_i32_0 : i32, i32
  }
  func.func @transform_4(%arg0: i32) -> (i32, i32) {
    %c0_i32 = arith.constant 0 : i32
    %c0_i32_0 = arith.constant 0 : i32
    %c0_i32_1 = arith.constant 0 : i32
    return %c0_i32, %c0_i32_0 : i32, i32
  }
  func.func @transform_5(%arg0: i32) -> (i32, i32) {
    %c0_i32 = arith.constant 0 : i32
    %c0_i32_0 = arith.constant 0 : i32
    %c0_i32_1 = arith.constant 0 : i32
    return %c0_i32, %c0_i32_0 : i32, i32
  }
  func.func @transform_6(%arg0: i32) -> (i32, i32) {
    %c0_i32 = arith.constant 0 : i32
    %c0_i32_0 = arith.constant 0 : i32
    %c0_i32_1 = arith.constant 0 : i32
    return %c0_i32, %c0_i32_0 : i32, i32
  }
  func.func @transform_7(%arg0: i32) -> (i32, i32) {
    %c0_i32 = arith.constant 0 : i32
    %c0_i32_0 = arith.constant 0 : i32
    %c0_i32_1 = arith.constant 0 : i32
    return %c0_i32, %c0_i32_0 : i32, i32
  }
  func.func @transform_8(%arg0: i32) -> (i32, i32, i32) {
    %c0_i32 = arith.constant 0 : i32
    %c0_i32_0 = arith.constant 0 : i32
    %c0_i32_1 = arith.constant 0 : i32
    return %arg0, %c0_i32, %c0_i32_0 : i32, i32, i32
  }
}

</mosaic_0001>

<bundles_post_ra>
// kernel: tpu_custom_call.1
= control target key start
LH: loop header
LB: loop body
LE: loop exit
PB: predicated region body
PF: predicated region fallthrough
CT: control target
= control target key end

     0   :  { %s5498_s0 = inlined_call_operand.hbm [shape: f32[2,8,128], index: 0, kind: input, shape index: {}]   ;;  %s5499_s1 = inlined_call_operand.hbm [shape: f32[2,8,128], index: 1, kind: input, shape index: {}]   ;;  %s5500_s2 = inlined_call_operand.hbm [shape: f32[2,8,128], index: 2, kind: input, shape index: {}]   ;;  %s5501_s3 = inlined_call_operand.hbm [shape: f32[128,128], index: 3, kind: input, shape index: {}]   ;;  %s5502_s4 = inlined_call_operand.hbm [shape: f32[128,128], index: 4, kind: input, shape index: {}]   ;;  %s5503_s5 = inlined_call_operand.hbm [shape: f32[128,128], index: 5, kind: input, shape index: {}]   ;;  %s5504_s6 = inlined_call_operand.hbm [shape: f32[128,128], index: 6, kind: input, shape index: {}]   ;;  %s5505_s7 = inlined_call_operand.vmem [shape: f32[1,128], index: 7, kind: input, shape index: {}]   ;;  %s5506_s8 = inlined_call_operand.hbm [shape: f32[2,8,128], index: 8, kind: output, shape index: {}]  }
   0x1   :  { %5525 = sst [smem:[#allocation25_spill]] %s5498_s0 }
   0x2   :  { %5526 = sst [smem:[#allocation26_spill]] %s5499_s1 }
   0x3   :  { %5527 = sst [smem:[#allocation27_spill]] %s5501_s3 }
   0x4   :  { %5528 = sst [smem:[#allocation28_spill]] %s5503_s5 }
   0x5   :  { %13 = vsyncpa [#allocation4], 0 }
   0x6   :  { %15 = vsyncpa [#allocation4 + $0x1], 0 }
   0x7   :  { %16 = vsyncpa [#allocation7], 0 }
   0x8   :  { %18 = vsyncpa [#allocation7 + $0x1], 0 }
   0x9   :  { %19 = vsyncpa [#allocation10], 0 }
   0xa   :  { %20 = vsyncpa [#allocation13], 0 }
   0xb   :  { %21 = vsyncpa [#allocation5], 0 }
   0xc   :  { %23 = vsyncpa [#allocation5 + $0x1], 0  ;;  %s4724_s27 = smov 0   ;;  %s4726_s28 = smov 0  }
   0xd   :  { %s4728_s29 = smov 0   ;;  %s4730_s30 = smov 0  }
   0xe LB: > { %5529 = sst [smem:[#allocation21_spill]] %s4650_s30  ;;  %s4652_s9 = smov [#allocation9]   ;;  %s4650_s30 = sphi %s4730_s30, %s5562_s30   ;;  %s4646_s29 = sphi %s4728_s29, %s5566_s29   ;;  %s4642_s28 = sphi %s4726_s28, %s5565_s28   ;;  %s4638_s27 = sphi %s4724_s27, %s5564_s27  }
   0xf   : > { %s255_s10 = sshll.u32 %s4652_s9, 4  ;;  %s4745_s11 = sadd.s32 4294967295, %s4650_s30   ;;  %s256_s10 = int_to_ptr.vmem [resolvable:$true] %s255_s10 }
  0x10   : > { %p3700_p0 = scmp.ge.s32.totalorder %s4650_s30, 1  ;;  %p5517_p1 = scmp.eq.s32.totalorder %s4745_s11, 0 }
  0x11   : > { %p243_p2 = scmp.lt.s32.totalorder %s4650_s30, 3  ;;  %s4653_s13 = smov [#allocation12]  }
  0x12   : > { %s281_s14 = sshll.u32 %s4653_s13, 4  ;;  %s4397_s16 = scalar_lea.vmem %s256_s10, 2048  ;;  %s282_s14 = int_to_ptr.vmem [resolvable:$true] %s281_s14 }
  0x13   : > { %p4750_p3 = pnand %p3700_p0, %p243_p2  ;;  %p4398_p8 = scmp.ne.s32.totalorder %s256_s10, %s4397_s16 }
  0x14   : > { %p4405_p11 = scmp.lt.s32.totalorder %s256_s10, %s256_s10  ;;  %p4406_p12 = scmp.lt.s32.totalorder %s4397_s16, %s4397_s16 }
  0x15   : > { %s5530_s12 = scalar_select %p4750_p3, 1, 0 }
  0x16   : > { %p4230_p5 = pneg %p4750_p3  ;;  %p4407_p13 = por %p4406_p12, %p4405_p11 }
  0x18   : > { %p4759_p6 = pnand %p4230_p5, %p5517_p1 }
  0x1a   : > { %s5531_s15 = scalar_select %p4759_p6, 1, 0 }
  0x1b   : > { %p5507_p7 = pneg %p4759_p6 }
  0x1d   : > { %p4400_p9 = pnand %p4398_p8, %p5507_p7 }
  0x1f   : > { %p4401_p10 = pneg %p4400_p9 }
  0x21   : > { %p4408_p0 = pnand %p4407_p13, %p4401_p10 }
  0x23   : > { %4411 = shalt.err (!%p4408_p0)
}
  0x24   : > { %s5509_s17 = smov 128   ;;  %s5511_s18 = smov 8  }
  0x25   : > { %s5532_s3 = sld [smem:[#allocation27_spill]]  ;;  %s4423_s21 = scalar_lea.vmem %s282_s14, 2048 }
  0x26   : > { %p4424_p2 = scmp.ne.s32.totalorder %s282_s14, %s4423_s21  ;;  %p4431_p9 = scmp.lt.s32.totalorder %s282_s14, %s282_s14 }
  0x27   : > { %p4432_p10 = scmp.lt.s32.totalorder %s4423_s21, %s4423_s21 }
  0x28   : > { %p4426_p5 = pnand %p4424_p2, %p5507_p7 }
  0x29   : > { %p4433_p11 = por %p4432_p10, %p4431_p9 }
  0x2a   : > { %p4427_p8 = pneg %p4426_p5 }
  0x2b   : > { %4233 = dma.hbm_to_vmem [thread:$0]  (!%p4759_p6), %s5532_s3, 2048, %s256_s10, [#allocation10], %s5509_s17, %s5509_s17, %s5511_s18  }
  0x2c   : > { %p4434_p12 = pnand %p4433_p11, %p4427_p8 }
  0x2e   : > { %4437 = shalt.err (!%p4434_p12)
}
  0x2f   : > { %s5533_s5 = sld [smem:[#allocation28_spill]]  ;;  %s3699_s24 = sadd.s32 4294967294, %s4650_s30  }
  0x30   : > { %s4789_s25 = sadd.s32 1, %s4650_s30   ;;  %s36_s9 = sadd.s32 1, %s4646_s29 }
  0x31   : > { %5534 = sst [smem:[#allocation22_spill]] %s4789_s25  ;;  %s33_s26 = ssub.s32 %s4650_s30, %s4789_s25 }
  0x32   : > { %p34_p13 = scmp.eq.s32.totalorder %s33_s26, 0  ;;  %p43_p0 = scmp.ne.s32.totalorder %s4646_s29, %s4642_s28 }
  0x33   : > { %p44_p2 = scmp.eq.s32.totalorder %s4650_s30, 0  ;;  %p49_p5 = scmp.ne.s32.totalorder %s4642_s28, %s4638_s27 }
  0x34   : > { %s4800_s10 = scalar_select %p34_p13, %s4646_s29, %s36_s9  }
  0x35   : > { %4239 = dma.hbm_to_vmem [thread:$0]  (!%p4759_p6), %s5533_s5, 2048, %s282_s14, [#allocation13], %s5509_s17, %s5509_s17, %s5511_s18  }
  0x36   : > { %5535 = sst [smem:[#allocation23_spill]] %s4800_s10  ;;  %p45_p8 = por %p44_p2, %p43_p0 }
  0x37   : > { %p4804_p9 = por %p5517_p1, %p49_p5  ;;  %p230_p10 = scmp.eq.s32.totalorder %s4745_s11, 1 }
  0x38   : > { %p236_p11 = scmp.eq.s32.totalorder %s3699_s24, 1  ;;  %p4261_p12 = scmp.lt.s32.totalorder %s4650_s30, 2 }
  0x39   : > { %s5536_s13 = scalar_select %p4804_p9, 1, 0 }
  0x3a   : > { %s5508_s14 = sand.u32 1, %s4646_s29   ;;  %p4811_p4 = por %p230_p10, %p43_p0 }
  0x3b   : > { %p4815_p7 = por %p236_p11, %p49_p5  ;;  %s4821_s20 = sshll.u32 %s5508_s14, 3 }
  0x3c   : > { %s5537_s16 = scalar_select %p4811_p4, 1, 0 }
  0x3d   : > { %s5538_s19 = scalar_select %p4815_p7, 1, 0 }
  0x3e   : > { %s4824_s21 = sshll.u32 %s4650_s30, 7  ;;  %p4826_p13 = pnand %p4261_p12, %p45_p8 }
  0x3f   : > { %5539 = sst [smem:[#allocation24_spill]] %s5538_s19  ;;  %s329_s23 = sand.u32 1, %s4650_s30  }
  0x40   : > { %s5541_s1 = sld [smem:[#allocation26_spill]]  ;;  %s333_s14 = scalar_lea.vmem [#allocation6], %s4821_s20 }
  0x41   : > { %s340_s17 = sshll.u32 %s333_s14, 4  ;;  %s4656_s18 = smov [#allocation11]   ;;  %s4838_s17 = int_to_ptr.vmem [resolvable:$true] %s340_s17 }
  0x42   : > { %s268_s3 = sshll.u32 %s4656_s18, 4  ;;  %s4840_s5 = scalar_lea.sflag [#allocation7], %s329_s23  ;;  %s269_s3 = int_to_ptr.vmem [resolvable:$true] %s268_s3 }
  0x43   : > { %p4846_p2 = pneg %p4826_p13 }
  0x45   : > { %s5542_s25 = scalar_select %p4846_p2, 1, 0 }
  0x46   : > { %s4835_s9 = scalar_lea.hbm %s5541_s1, %s4824_s21  ;;  %s4443_s14 = scalar_lea.hbm %s5541_s1, 256 }
  0x47   : > { %s4438_s10 = scalar_lea.hbm %s4835_s9, 128  ;;  %p4444_p10 = scmp.lt.s32.totalorder %s4835_s9, %s5541_s1 }
  0x48   : > { %p4439_p0 = scmp.ne.s32.totalorder %s4835_s9, %s4438_s10  ;;  %p4445_p11 = scmp.lt.s32.totalorder %s4443_s14, %s4438_s10 }
  0x4a   : > { %p4441_p5 = pnand %p4846_p2, %p4439_p0  ;;  %p4446_p12 = por %p4445_p11, %p4444_p10 }
  0x4c   : > { %p4442_p8 = pneg %p4441_p5 }
  0x4e   : > { %p4447_p1 = pnand %p4446_p12, %p4442_p8 }
  0x50   : > { %4450 = shalt.err (!%p4447_p1)
}
  0x51   : > { %s4451_s18 = scalar_lea.vmem %s4838_s17, 128  ;;  %s4657_s23 = smov [#allocation6]  }
  0x52   : > { %p4452_p7 = scmp.ne.s32.totalorder %s4838_s17, %s4451_s18  ;;  %s4456_s24 = sshll.u32 %s4657_s23, 4  ;;  %s4457_s24 = int_to_ptr.vmem [resolvable:$false] %s4456_s24 }
  0x53   : > { %s4458_s26 = scalar_lea.vmem %s4457_s24, 256  ;;  %p4459_p4 = scmp.lt.s32.totalorder %s4838_s17, %s4457_s24 }
  0x54   : > { %p4454_p0 = pnand %p4452_p7, %p4846_p2  ;;  %p4460_p9 = scmp.lt.s32.totalorder %s4458_s26, %s4451_s18 }
  0x56   : > { %p4455_p5 = pneg %p4454_p0  ;;  %p4461_p3 = por %p4460_p9, %p4459_p4 }
  0x58   : > { %p4462_p6 = pnand %p4461_p3, %p4455_p5 }
  0x5a   : > { %4465 = shalt.err (!%p4462_p6)
}
  0x5b   : > { %4249 = dma.hbm_to_vmem [thread:$0]  (!%p4826_p13), %s4835_s9, 128, %s4838_s17, %s4840_s5  }
  0x5c   : > { %s4477_s30 = scalar_lea.vmem %s269_s3, 2048  ;;  %p5543_p7 = scmp.ne.s32.totalorder %s5531_s15, 0 }
  0x5d   : > { %p4478_p1 = scmp.ne.s32.totalorder %s269_s3, %s4477_s30  ;;  %p4485_p12 = scmp.lt.s32.totalorder %s269_s3, %s269_s3 }
  0x5e   : > { %p5544_p8 = pneg %p5543_p7  ;;  %p4486_p0 = scmp.lt.s32.totalorder %s4477_s30, %s4477_s30 }
  0x60   : > { %p4480_p10 = pnand %p4478_p1, %p5544_p8  ;;  %p4487_p2 = por %p4486_p0, %p4485_p12 }
  0x62   : > { %p4481_p11 = pneg %p4480_p10 }
  0x64   : > { %p4488_p4 = pnand %p4487_p2, %p4481_p11 }
  0x66   : > { %4491 = shalt.err (!%p4488_p4)
}
  0x67   : > { %s5545_s10 = smov 8   ;;  %s5546_s19 = smov 128  }
  0x68   : > { %4236 = dma.hbm_to_vmem [thread:$0]  (!%p5543_p7), %s5502_s4, 2048, %s269_s3, [#allocation10], %s5546_s19, %s5546_s19, %s5545_s10  }
  0x69   : > { %s4658_s17 = smov [#allocation14]   ;;  %p5547_p6 = pmov %p5544_p8 }
  0x6a   : > { %s294_s9 = sshll.u32 %s4658_s17, 4  ;;  %s295_s9 = int_to_ptr.vmem [resolvable:$true] %s294_s9 }
  0x6b   : > { %s4503_s23 = scalar_lea.vmem %s295_s9, 2048  ;;  %p4511_p5 = scmp.lt.s32.totalorder %s295_s9, %s295_s9 }
  0x6c   : > { %p4504_p3 = scmp.ne.s32.totalorder %s295_s9, %s4503_s23  ;;  %p4512_p1 = scmp.lt.s32.totalorder %s4503_s23, %s4503_s23 }
  0x6e   : > { %p4506_p9 = pnand %p4504_p3, %p5547_p6  ;;  %p4513_p8 = por %p4512_p1, %p4511_p5 }
  0x70   : > { %p4507_p2 = pneg %p4506_p9 }
  0x72   : > { %p4514_p10 = pnand %p4513_p8, %p4507_p2 }
  0x74   : > { %4517 = shalt.err (!%p4514_p10)
}
  0x75   : > { %4242 = dma.hbm_to_vmem [thread:$0]  (!%p5543_p7), %s5504_s6, 2048, %s295_s9, [#allocation13], %s5546_s19, %s5546_s19, %s5545_s10  }
  0x76   : > { %s5548_s0 = sld [smem:[#allocation25_spill]]  ;;  %s315_s15 = scalar_lea.vmem [#allocation3], %s4821_s20 }
  0x77   : > { %s322_s18 = sshll.u32 %s315_s15, 4  ;;  %s5549_s17 = sand.u32 1, %s4646_s29   ;;  %s323_s18 = int_to_ptr.vmem [resolvable:$true] %s322_s18 }
  0x78   : > { %s312_s23 = scalar_lea.sflag [#allocation4], %s5549_s17  ;;  %p5550_p12 = scmp.ne.s32.totalorder %s5542_s25, 0 }
  0x7c   : > { %s4895_s14 = scalar_lea.hbm %s5548_s0, %s4824_s21  ;;  %s4523_s19 = scalar_lea.hbm %s5548_s0, 256 }
  0x7d   : > { %s4518_s1 = scalar_lea.hbm %s4895_s14, 128  ;;  %p4524_p7 = scmp.lt.s32.totalorder %s4895_s14, %s5548_s0 }
  0x7e   : > { %p4519_p11 = scmp.ne.s32.totalorder %s4895_s14, %s4518_s1  ;;  %p4525_p3 = scmp.lt.s32.totalorder %s4523_s19, %s4518_s1 }
  0x80   : > { %p4521_p0 = pnand %p4519_p11, %p5550_p12  ;;  %p4526_p6 = por %p4525_p3, %p4524_p7 }
  0x82   : > { %p4522_p4 = pneg %p4521_p0 }
  0x84   : > { %p4527_p9 = pnand %p4526_p6, %p4522_p4 }
  0x86   : > { %4530 = shalt.err (!%p4527_p9)
}
  0x87   : > { %s4531_s26 = scalar_lea.vmem %s323_s18, 128  ;;  %s4659_s30 = smov [#allocation3]  }
  0x88   : > { %p4532_p2 = scmp.ne.s32.totalorder %s323_s18, %s4531_s26  ;;  %s4536_s15 = sshll.u32 %s4659_s30, 4  ;;  %s4537_s15 = int_to_ptr.vmem [resolvable:$false] %s4536_s15 }
  0x89   : > { %s4538_s17 = scalar_lea.vmem %s4537_s15, 256  ;;  %p4539_p8 = scmp.lt.s32.totalorder %s323_s18, %s4537_s15 }
  0x8a   : > { %p4534_p5 = pnand %p4532_p2, %p5550_p12  ;;  %p4540_p10 = scmp.lt.s32.totalorder %s4538_s17, %s4531_s26 }
  0x8c   : > { %p4535_p1 = pneg %p4534_p5  ;;  %p4541_p11 = por %p4540_p10, %p4539_p8 }
  0x8e   : > { %p4542_p0 = pnand %p4541_p11, %p4535_p1 }
  0x90   : > { %4545 = shalt.err (!%p4542_p0)
}
  0x91   : > { %4246 = dma.hbm_to_vmem [thread:$0]  (!%p4826_p13), %s4895_s14, 128, %s323_s18, %s312_s23  }
  0x92   : > { %s356_s10 = scalar_lea.hbm %s5500_s2, %s4824_s21  ;;  %s351_s19 = scalar_lea.vmem [#allocation8], %s4821_s20 }
  0x93   : > { %s358_s9 = sshll.u32 %s351_s19, 4  ;;  %s4546_s24 = scalar_lea.hbm %s356_s10, 128  ;;  %s359_s9 = int_to_ptr.vmem [resolvable:$true] %s358_s9 }
  0x94   : > { %p4547_p4 = scmp.ne.s32.totalorder %s356_s10, %s4546_s24  ;;  %s4551_s15 = scalar_lea.hbm %s5500_s2, 256 }
  0x95   : > { %p4552_p6 = scmp.lt.s32.totalorder %s356_s10, %s5500_s2  ;;  %p4553_p9 = scmp.lt.s32.totalorder %s4551_s15, %s4546_s24 }
  0x96   : > { %p4549_p7 = pnand %p4547_p4, %p5550_p12 }
  0x97   : > { %p4554_p2 = por %p4553_p9, %p4552_p6 }
  0x98   : > { %p4550_p3 = pneg %p4549_p7 }
  0x9a   : > { %p4555_p5 = pnand %p4554_p2, %p4550_p3 }
  0x9c   : > { %4558 = shalt.err (!%p4555_p5)
}
  0x9d   : > { %s4559_s20 = scalar_lea.vmem %s359_s9, 128  ;;  %s4660_s21 = smov [#allocation8]  }
  0x9e   : > { %p4560_p1 = scmp.ne.s32.totalorder %s359_s9, %s4559_s20  ;;  %s4564_s14 = sshll.u32 %s4660_s21, 4  ;;  %s4565_s14 = int_to_ptr.vmem [resolvable:$false] %s4564_s14 }
  0x9f   : > { %s4566_s18 = scalar_lea.vmem %s4565_s14, 256  ;;  %p4567_p11 = scmp.lt.s32.totalorder %s359_s9, %s4565_s14 }
  0xa0   : > { %p4562_p8 = pnand %p4560_p1, %p5550_p12  ;;  %p4568_p0 = scmp.lt.s32.totalorder %s4566_s18, %s4559_s20 }
  0xa2   : > { %p4563_p10 = pneg %p4562_p8  ;;  %p4569_p4 = por %p4568_p0, %p4567_p11 }
  0xa4   : > { %p4570_p7 = pnand %p4569_p4, %p4563_p10 }
  0xa6   : > { %4573 = shalt.err (!%p4570_p7)
}
  0xa7   : > { %4252 = dma.hbm_to_vmem [thread:$0]  (!%p4826_p13), %s356_s10, 128, %s359_s9, %s4840_s5  }
  0xa8   : > { %p5551_p3 = scmp.ne.s32.totalorder %s5530_s12, 0 }
  0xa9   : > { %s4937_s0 = sand.u32 (!%p5551_p3), 1, %s4642_s28   ;;  %p5552_p12 = scmp.ne.s32.totalorder (!%p5551_p3), %s5536_s13, 0 }
  0xaa   : > { %367 = sbr.rel (%p5551_p3) target bundleno = 1667 (0x683), region = 52  ;;  %s4940_s25 = sshll.u32 (!%p5551_p3), %s4937_s0, 3 }
  0xab   : > { %s370_s23 = scalar_lea.sflag (!%p5551_p3), [#allocation4], %s4937_s0  ;;  %s373_s1 = scalar_lea.vmem (!%p5551_p3), [#allocation3], %s4940_s25 }
  0xaf   : > { %4617 = dma.done.wait (%p5552_p12), %s370_s23, 128  }
  0xb0   : > { %4619 = vsyncadd (%p5552_p12), %s370_s23, 4294967168  ;;  %s378_s5 = sand.u32 1, %s4745_s11   ;;  %s382_s22 = scalar_lea.vmem [#allocation6], %s4940_s25 }
  0xb1   : > { %s379_s12 = scalar_lea.sflag [#allocation7], %s378_s5 }
  0xb2   : > { %4621 = dma.done.wait (%p5552_p12), %s379_s12, 256  }
  0xb3   : > { %4623 = vsyncadd (%p5552_p12), %s379_s12, 4294967040  ;;  %s391_s3 = scalar_lea.vmem [#allocation8], %s4940_s25  ;;  %p5553_p13 = scmp.eq.s32.totalorder %s4745_s11, 0 }
  0xb5   : > { %4625 = dma.done.wait (%p5553_p13), [#allocation10], 4096   ;;  %p5554_p6 = pmov %p5553_p13 }
  0xb7   : > { %4627 = vsyncadd (%p5554_p6), [#allocation10], 4294963200  ;;  %p5555_p9 = pmov %p5554_p6 }
  0xb8   : > { %p5556_p2 = pmov %p5554_p6 }
  0xb9   : > { %4629 = dma.done.wait (%p5555_p9), [#allocation13], 4096  }
  0xba   : > { %4631 = vsyncadd (%p5556_p2), [#allocation13], 4294963200  ;;  %v4661_v0 = vmov 0.0   ;;  %vm4662_vm0 = vmmov 0   ;;  %v554_v1 = vld [vmem:[#allocation11 + $0x78] sm:$0xff]  ;;  %v553_v3 = vld [vmem:[#allocation11 + $0x70] sm:$0xff] }
  0xbb   : > { %3941 = vmatprep.subr.mxu1 %v4661_v0  ;;  %3906 = vmatprep.subr.mxu0 %v4661_v0  ;;  %v468_v2 = vld [vmem:[#allocation9 + $0x78] sm:$0xff]  ;;  %v467_v4 = vld [vmem:[#allocation9 + $0x70] sm:$0xff]  ;;  %v552_v5 = vld [vmem:[#allocation11 + $0x68] sm:$0xff]  ;;  %vm819_vm1 = vcmask 64512   ;;  %s4663_s13 = smov 112   ;;  %s4664_s10 = smov 120  }
  0xbc   : > { %3973 = vmatprep.mubr.msk.f32.mxu1 %vm4662_vm0, %v4661_v0  ;;  %3938 = vmatprep.mubr.msk.f32.mxu0 %vm4662_vm0, %v4661_v0  ;;  %v466_v6 = vld [vmem:[#allocation9 + $0x68] sm:$0xff]  ;;  %v551_v7 = vld [vmem:[#allocation11 + $0x60] sm:$0xff]  ;;  %v550_v9 = vld [vmem:[#allocation11 + $0x58] sm:$0xff]  ;;  %s4665_s19 = smov 104   ;;  %s4666_s9 = smov 96   ;;  %vm3353_vm2 = vcmask 130112  }
  0xbd   : > { %3942 = vmatpush3.msra.mxu1 %v554_v1  ;;  %3907 = vmatpush3.msra.mxu0 %v468_v2  ;;  %v465_v8 = vld [vmem:[#allocation9 + $0x60] sm:$0xff]  ;;  %v464_v10 = vld [vmem:[#allocation9 + $0x58] sm:$0xff]  ;;  %v549_v11 = vld [vmem:[#allocation11 + $0x50] sm:$0xff]  ;;  %s4667_s24 = smov 88   ;;  %s4668_s26 = smov 80   ;;  %vm3359_vm3 = vcmask 195712  }
  0xbe   : > { %3943 = vmatprep.subr.mxu1 %v4661_v0  ;;  %3908 = vmatprep.subr.mxu0 %v4661_v0  ;;  %v463_v12 = vld [vmem:[#allocation9 + $0x50] sm:$0xff]  ;;  %v548_v13 = vld [vmem:[#allocation11 + $0x48] sm:$0xff]  ;;  %v547_v15 = vld [vmem:[#allocation11 + $0x40] sm:$0xff]  ;;  %s4669_s30 = smov 72   ;;  %s4670_s15 = smov 64   ;;  %vm3365_vm4 = vcmask 261312  }
  0xbf   : > { %3944 = vmatpush3.msra.mxu1 %v553_v3  ;;  %3909 = vmatpush3.msra.mxu0 %v467_v4  ;;  %v462_v14 = vld [vmem:[#allocation9 + $0x48] sm:$0xff]  ;;  %v461_v16 = vld [vmem:[#allocation9 + $0x40] sm:$0xff]  ;;  %v546_v17 = vld [vmem:[#allocation11 + $0x38] sm:$0xff]  ;;  %s4671_s17 = smov 56   ;;  %s4672_s20 = smov 48   ;;  %vm3371_vm5 = vcmask 326912  }
  0xc0   : > { %3945 = vmatprep.subr.mxu1 %v4661_v0  ;;  %3910 = vmatprep.subr.mxu0 %v4661_v0  ;;  %v460_v18 = vld [vmem:[#allocation9 + $0x38] sm:$0xff]  ;;  %v545_v19 = vld [vmem:[#allocation11 + $0x30] sm:$0xff]  ;;  %v544_v21 = vld [vmem:[#allocation11 + $0x28] sm:$0xff]  ;;  %s4673_s21 = smov 40   ;;  %s4674_s14 = smov 32   ;;  %vm3377_vm6 = vcmask 392512  }
  0xc1   : > { %3946 = vmatpush3.msra.mxu1 %v552_v5  ;;  %3911 = vmatpush3.msra.mxu0 %v466_v6  ;;  %v459_v20 = vld [vmem:[#allocation9 + $0x30] sm:$0xff]  ;;  %v458_v22 = vld [vmem:[#allocation9 + $0x28] sm:$0xff]  ;;  %v543_v23 = vld [vmem:[#allocation11 + $0x20] sm:$0xff]  ;;  %s4675_s18 = smov 24   ;;  %s4676_s23 = smov 16   ;;  %vm3383_vm7 = vcmask 458112  }
  0xc2   : > { %3947 = vmatprep.subr.mxu1 %v4661_v0  ;;  %3912 = vmatprep.subr.mxu0 %v4661_v0  ;;  %v457_v24 = vld [vmem:[#allocation9 + $0x20] sm:$0xff]  ;;  %v542_v25 = vld [vmem:[#allocation11 + $0x18] sm:$0xff]  ;;  %v541_v27 = vld [vmem:[#allocation11 + $0x10] sm:$0xff]  ;;  %vm3389_vm8 = vcmask 523712   ;;  %vm3395_vm9 = vcmask 589312   ;;  %vm3401_vm10 = vcmask 654912  }
  0xc3   : > { %3948 = vmatpush3.msra.mxu1 %v551_v7  ;;  %3913 = vmatpush3.msra.mxu0 %v465_v8  ;;  %v456_v26 = vld [vmem:[#allocation9 + $0x18] sm:$0xff]  ;;  %v455_v28 = vld [vmem:[#allocation9 + $0x10] sm:$0xff]  ;;  %v540_v29 = vld [vmem:[#allocation11 + $0x8] sm:$0xff]  ;;  %vm3407_vm11 = vcmask 720512   ;;  %vm3413_vm12 = vcmask 786112   ;;  %vm3419_vm13 = vcmask 851712  }
  0xc4   : > { %3949 = vmatprep.subr.mxu1 %v4661_v0  ;;  %3914 = vmatprep.subr.mxu0 %v4661_v0  ;;  %v454_v30 = vld [vmem:[#allocation9 + $0x8] sm:$0xff]  ;;  %v539_v31 = vld [vmem:[#allocation11] sm:$0xff]  ;;  %v450_v34 = vld [vmem:[%s373_s1] sm:$0xff]  ;;  %s4677_s1 = smov 8   ;;  %vm3425_vm14 = vcmask 917312   ;;  %vm3431_vm15 = vcmask 982912  }
  0xc5   : > { %3950 = vmatpush3.msra.mxu1 %v550_v9  ;;  %3915 = vmatpush3.msra.mxu0 %v464_v10  ;;  %v453_v32 = vld [vmem:[#allocation9] sm:$0xff]  ;;  %v640_v35 = vld [vmem:[#allocation12 + $0x78] sm:$0xff]  ;;  %v639_v36 = vld [vmem:[#allocation12 + $0x70] sm:$0xff]  ;;  %p5557_p1 = scmp.ne.s32.totalorder %s5537_s16, 0 }
  0xc6   : > { %3951 = vmatprep.subr.mxu1 %v4661_v0  ;;  %3916 = vmatprep.subr.mxu0 %v4661_v0  ;;  %v451_v33 = vld [vmem:[%s382_s22] sm:$0xff]  ;;  %v636_v39 = vld [vmem:[#allocation12 + $0x58] sm:$0xff]  ;;  %v635_v40 = vld [vmem:[#allocation12 + $0x50] sm:$0xff]  ;;  %s3771_s22 = sshll.u32 %s4745_s11, 7 }
  0xc7   : > { %3952 = vmatpush3.msra.mxu1 %v549_v11  ;;  %3917 = vmatpush3.msra.mxu0 %v463_v12  ;;  %v638_v37 = vld [vmem:[#allocation12 + $0x68] sm:$0xff]  ;;  %v637_v38 = vld [vmem:[#allocation12 + $0x60] sm:$0xff]  ;;  %v632_v43 = vld [vmem:[#allocation12 + $0x38] sm:$0xff] }
  0xc8   : > { %3953 = vmatprep.subr.mxu1 %v4661_v0  ;;  %3918 = vmatprep.subr.mxu0 %v4661_v0  ;;  %v634_v41 = vld [vmem:[#allocation12 + $0x48] sm:$0xff]  ;;  %v633_v42 = vld [vmem:[#allocation12 + $0x40] sm:$0xff]  ;;  %v631_v44 = vld [vmem:[#allocation12 + $0x30] sm:$0xff] }
  0xc9   : > { %3954 = vmatpush3.msra.mxu1 %v548_v13  ;;  %3919 = vmatpush3.msra.mxu0 %v462_v14  ;;  %v630_v45 = vld [vmem:[#allocation12 + $0x28] sm:$0xff]  ;;  %v629_v46 = vld [vmem:[#allocation12 + $0x20] sm:$0xff]  ;;  %v628_v47 = vld [vmem:[#allocation12 + $0x18] sm:$0xff] }
  0xca   : > { %3955 = vmatprep.subr.mxu1 %v4661_v0  ;;  %3920 = vmatprep.subr.mxu0 %v4661_v0  ;;  %v627_v48 = vld [vmem:[#allocation12 + $0x10] sm:$0xff]  ;;  %v626_v49 = vld [vmem:[#allocation12 + $0x8] sm:$0xff]  ;;  %v625_v50 = vld [vmem:[#allocation12] sm:$0xff] }
  0xcb   : > { %3956 = vmatpush3.msra.mxu1 %v547_v15  ;;  %3921 = vmatpush3.msra.mxu0 %v461_v16  ;;  %v452_v51 = vld [vmem:[%s391_s3] sm:$0xff]  ;;  %s449_s3 = scalar_lea.vmem [#allocation15], %s4940_s25 }
  0xcc   : > { %3957 = vmatprep.subr.mxu1 %v4661_v0  ;;  %3922 = vmatprep.subr.mxu0 %v4661_v0 }
  0xcd   : > { %3958 = vmatpush3.msra.mxu1 %v546_v17  ;;  %3923 = vmatpush3.msra.mxu0 %v460_v18 }
  0xce   : > { %3959 = vmatprep.subr.mxu1 %v4661_v0  ;;  %3924 = vmatprep.subr.mxu0 %v4661_v0 }
  0xcf   : > { %3960 = vmatpush3.msra.mxu1 %v545_v19  ;;  %3925 = vmatpush3.msra.mxu0 %v459_v20 }
  0xd0   : > { %3961 = vmatprep.subr.mxu1 %v4661_v0  ;;  %3926 = vmatprep.subr.mxu0 %v4661_v0 }
  0xd1   : > { %3962 = vmatpush3.msra.mxu1 %v544_v21  ;;  %3927 = vmatpush3.msra.mxu0 %v458_v22 }
  0xd2   : > { %3963 = vmatprep.subr.mxu1 %v4661_v0  ;;  %3928 = vmatprep.subr.mxu0 %v4661_v0 }
  0xd3   : > { %3964 = vmatpush3.msra.mxu1 %v543_v23  ;;  %3929 = vmatpush3.msra.mxu0 %v457_v24 }
  0xd4   : > { %3965 = vmatprep.subr.mxu1 %v4661_v0  ;;  %3930 = vmatprep.subr.mxu0 %v4661_v0 }
  0xd5   : > { %3966 = vmatpush3.msra.mxu1 %v542_v25  ;;  %3931 = vmatpush3.msra.mxu0 %v456_v26 }
  0xd6   : > { %3967 = vmatprep.subr.mxu1 %v4661_v0  ;;  %3932 = vmatprep.subr.mxu0 %v4661_v0 }
  0xd7   : > { %3968 = vmatpush3.msra.mxu1 %v541_v27  ;;  %3933 = vmatpush3.msra.mxu0 %v455_v28 }
  0xd8   : > { %3969 = vmatprep.subr.mxu1 %v4661_v0  ;;  %3934 = vmatprep.subr.mxu0 %v4661_v0 }
  0xd9   : > { %3970 = vmatpush3.msra.mxu1 %v540_v29  ;;  %3935 = vmatpush3.msra.mxu0 %v454_v30 }
  0xda   : > { %3971 = vmatprep.subr.mxu1 %v4661_v0  ;;  %3936 = vmatprep.subr.mxu0 %v4661_v0 }
  0xdb   : > { %3972 = vmatpush3.msra.mxu1 %v539_v31  ;;  %3937 = vmatpush3.msra.mxu0 %v453_v32 }
  0xdc   : > { %3974 = vmatmul.mubr.f32.vlgmr.msra.gmra.mxu1 %v451_v33  ;;  %3939 = vmatmul.mubr.f32.vlgmr.msra.gmra.mxu0 %v450_v34 }
  0xdd   : > { %3976 = vmatprep.subr.mxu0 %v4661_v0  ;;  %4008 = vmatprep.mubr.msk.f32.mxu0 %vm4662_vm0, %v4661_v0 }
  0xde   : > { %3977 = vmatpush3.msra.mxu0 %v640_v35  ;;  %4011 = vmatprep.subr.mxu1 %v4661_v0 }
  0xdf   : > { %3978 = vmatprep.subr.mxu0 %v4661_v0  ;;  %4013 = vmatprep.mubr.msk.f32.mxu1 %vm4662_vm0, %v4661_v0 }
  0xe0   : > { %3979 = vmatpush3.msra.mxu0 %v639_v36 }
  0xe1   : > { %3980 = vmatprep.subr.mxu0 %v4661_v0 }
  0xe2   : > { %3981 = vmatpush3.msra.mxu0 %v638_v37 }
  0xe3   : > { %3982 = vmatprep.subr.mxu0 %v4661_v0 }
  0xe4   : > { %3983 = vmatpush3.msra.mxu0 %v637_v38 }
  0xe5   : > { %3984 = vmatprep.subr.mxu0 %v4661_v0 }
  0xe6   : > { %3985 = vmatpush3.msra.mxu0 %v636_v39 }
  0xe7   : > { %3986 = vmatprep.subr.mxu0 %v4661_v0 }
  0xe8   : > { %3987 = vmatpush3.msra.mxu0 %v635_v40 }
  0xe9   : > { %3988 = vmatprep.subr.mxu0 %v4661_v0 }
  0xea   : > { %3989 = vmatpush3.msra.mxu0 %v634_v41 }
  0xeb   : > { %3990 = vmatprep.subr.mxu0 %v4661_v0 }
  0xec   : > { %3991 = vmatpush3.msra.mxu0 %v633_v42 }
  0xed   : > { %3992 = vmatprep.subr.mxu0 %v4661_v0 }
  0xee   : > { %3993 = vmatpush3.msra.mxu0 %v632_v43 }
  0xef   : > { %3994 = vmatprep.subr.mxu0 %v4661_v0 }
  0xf0   : > { %3995 = vmatpush3.msra.mxu0 %v631_v44 }
  0xf1   : > { %3996 = vmatprep.subr.mxu0 %v4661_v0 }
  0xf2   : > { %3997 = vmatpush3.msra.mxu0 %v630_v45 }
  0xf3   : > { %3998 = vmatprep.subr.mxu0 %v4661_v0 }
  0xf4   : > { %3999 = vmatpush3.msra.mxu0 %v629_v46 }
  0xf5   : > { %4000 = vmatprep.subr.mxu0 %v4661_v0 }
  0xf6   : > { %4001 = vmatpush3.msra.mxu0 %v628_v47 }
  0xf7   : > { %4002 = vmatprep.subr.mxu0 %v4661_v0 }
  0xf8   : > { %4003 = vmatpush3.msra.mxu0 %v627_v48 }
  0xf9   : > { %4004 = vmatprep.subr.mxu0 %v4661_v0 }
  0xfa   : > { %4005 = vmatpush3.msra.mxu0 %v626_v49 }
  0xfb   : > { %4006 = vmatprep.subr.mxu0 %v4661_v0 }
  0xfc   : > { %4007 = vmatpush3.msra.mxu0 %v625_v50 }
  0xfd   : > { %4009 = vmatmul.mubr.f32.vlgmr.msra.gmra.mxu0 %v452_v51  ;;  %4091 = vmatprep.subr.mxu0 %v4661_v0 }
  0xfe   : > { %4093 = vmatprep.mubr.msk.f32.mxu0 %vm4662_vm0, %v4661_v0 }
 0x19c   : > { %v621_v52 = vpop.f32.mrf.mxu1  ;;  %v535_v53 = vpop.f32.mrf.mxu0 }
 0x19d   : > { %745 = vrot.lane.b32.xlu1 %v621_v52, %s4663_s13  ;;  %743 = vrot.lane.b32.xlu0 %v621_v52, %s4664_s10 }
 0x19e   : > { %4012 = vmatpush3.xpose.msk.msra.mxu1 %vm819_vm1, %v621_v52  ;;  %v3975_v54 = vpop.f32.mrf.mxu1  ;;  %v3940_v55 = vpop.f32.mrf.mxu0 }
 0x19f   : > { %4016 = vmatprep.subr.mxu1 %v4661_v0 }
 0x1a1   : > { %4014 = vmatmul.mubr.msk.f32.vlgmr.msra.gmra.mxu1 %vm819_vm1, %v535_v53  ;;  %714 = vrot.lane.b32.xlu1 %v535_v53, %s4663_s13 }
 0x1a2   : > { %712 = vrot.lane.b32.xlu0 %v535_v53, %s4664_s10  ;;  %4018 = vmatprep.mubr.msk.f32.mxu1 %vm4662_vm0, %v4661_v0 }
 0x1a5   : > { %716 = vrot.lane.b32.xlu1 %v535_v53, %s4665_s19 }
 0x1a6   : > { %747 = vrot.lane.b32.xlu0 %v621_v52, %s4665_s19 }
 0x1a9   : > { %718 = vrot.lane.b32.xlu1 %v535_v53, %s4666_s9 }
 0x1aa   : > { %749 = vrot.lane.b32.xlu0 %v621_v52, %s4666_s9 }
 0x1ad   : > { %720 = vrot.lane.b32.xlu1 %v535_v53, %s4667_s24 }
 0x1ae   : > { %751 = vrot.lane.b32.xlu0 %v621_v52, %s4667_s24 }
 0x1b1   : > { %722 = vrot.lane.b32.xlu1 %v535_v53, %s4668_s26 }
 0x1b2   : > { %753 = vrot.lane.b32.xlu0 %v621_v52, %s4668_s26 }
 0x1b5   : > { %724 = vrot.lane.b32.xlu1 %v535_v53, %s4669_s30 }
 0x1b6   : > { %755 = vrot.lane.b32.xlu0 %v621_v52, %s4669_s30 }
 0x1b9   : > { %726 = vrot.lane.b32.xlu1 %v535_v53, %s4670_s15 }
 0x1ba   : > { %757 = vrot.lane.b32.xlu0 %v621_v52, %s4670_s15 }
 0x1bd   : > { %728 = vrot.lane.b32.xlu1 %v535_v53, %s4671_s17  ;;  %v5052_v56 = vpop.f32.mrf.mxu0 }
 0x1be   : > { %759 = vrot.lane.b32.xlu0 %v621_v52, %s4671_s17  ;;  %4092 = vmatpush3.msra.mxu0 %v5052_v56 }
 0x1bf   : > { %v4010_v57 = vpop.f32.mrf.mxu0  ;;  %4101 = vmatprep.subr.mxu0 %v4661_v0 }
 0x1c1   : > { %730 = vrot.lane.b32.xlu1 %v535_v53, %s4672_s20 }
 0x1c2   : > { %761 = vrot.lane.b32.xlu0 %v621_v52, %s4672_s20 }
 0x1c5   : > { %732 = vrot.lane.b32.xlu1 %v535_v53, %s4673_s21 }
 0x1c6   : > { %763 = vrot.lane.b32.xlu0 %v621_v52, %s4673_s21 }
 0x1c9   : > { %734 = vrot.lane.b32.xlu1 %v535_v53, %s4674_s14 }
 0x1ca   : > { %765 = vrot.lane.b32.xlu0 %v621_v52, %s4674_s14 }
 0x1cd   : > { %736 = vrot.lane.b32.xlu1 %v535_v53, %s4675_s18 }
 0x1ce   : > { %767 = vrot.lane.b32.xlu0 %v621_v52, %s4675_s18 }
 0x1d1   : > { %738 = vrot.lane.b32.xlu1 %v535_v53, %s4676_s23 }
 0x1d2   : > { %769 = vrot.lane.b32.xlu0 %v621_v52, %s4676_s23 }
 0x1d5   : > { %740 = vrot.lane.b32.xlu1 %v535_v53, %s4677_s1 }
 0x1d6   : > { %771 = vrot.lane.b32.xlu0 %v621_v52, %s4677_s1 }
 0x1d9   : > { %774 = vrot.lane.b32.xlu1 %v5052_v56, %s4664_s10 }
 0x1da   : > { %777 = vrot.lane.b32.xlu0 %v5052_v56, %s4663_s13 }
 0x1dd   : > { %780 = vrot.lane.b32.xlu1 %v5052_v56, %s4665_s19 }
 0x1de   : > { %792 = vrot.lane.b32.xlu0 %v5052_v56, %s4669_s30 }
 0x1e1   : > { %783 = vrot.lane.b32.xlu1 %v5052_v56, %s4666_s9 }
 0x1e5   : > { %786 = vrot.lane.b32.xlu1 %v5052_v56, %s4667_s24 }
 0x1e9   : > { %789 = vrot.lane.b32.xlu1 %v5052_v56, %s4668_s26 }
 0x20f   : > { %v746_v58 = vpop.permute.xlu1 %745  ;;  %v744_v59 = vpop.permute.xlu0 %743 }
 0x210   : > { %4017 = vmatpush3.xpose.msk.msra.mxu1 %vm819_vm1, %v744_v59 }
 0x211   : > { %4021 = vmatprep.subr.mxu1 %v4661_v0 }
 0x213   : > { %v715_v60 = vpop.permute.xlu1 %714 }
 0x214   : > { %v713_v61 = vpop.permute.xlu0 %712 }
 0x215   : > { %4019 = vmatmul.mubr.msk.f32.vlgmr.msra.gmra.mxu1 %vm819_vm1, %v713_v61 }
 0x216   : > { %4022 = vmatpush3.xpose.msk.msra.mxu1 %vm819_vm1, %v746_v58  ;;  %4023 = vmatprep.mubr.msk.f32.mxu1 %vm4662_vm0, %v4661_v0 }
 0x217   : > { %v717_v62 = vpop.permute.xlu1 %716  ;;  %4026 = vmatprep.subr.mxu1 %v4661_v0 }
 0x218   : > { %v748_v63 = vpop.permute.xlu0 %747 }
 0x219   : > { %4024 = vmatmul.mubr.msk.f32.vlgmr.msra.gmra.mxu1 %vm819_vm1, %v715_v60 }
 0x21a   : > { %4027 = vmatpush3.xpose.msk.msra.mxu1 %vm819_vm1, %v748_v63  ;;  %4028 = vmatprep.mubr.msk.f32.mxu1 %vm4662_vm0, %v4661_v0 }
 0x21b   : > { %v719_v1 = vpop.permute.xlu1 %718  ;;  %4031 = vmatprep.subr.mxu1 %v4661_v0 }
 0x21c   : > { %v750_v2 = vpop.permute.xlu0 %749 }
 0x21d   : > { %4029 = vmatmul.mubr.msk.f32.vlgmr.msra.gmra.mxu1 %vm819_vm1, %v717_v62 }
 0x21e   : > { %4032 = vmatpush3.xpose.msk.msra.mxu1 %vm819_vm1, %v750_v2  ;;  %4033 = vmatprep.mubr.msk.f32.mxu1 %vm4662_vm0, %v4661_v0 }
 0x21f   : > { %v721_v3 = vpop.permute.xlu1 %720  ;;  %4036 = vmatprep.subr.mxu1 %v4661_v0 }
 0x220   : > { %v752_v4 = vpop.permute.xlu0 %751 }
 0x221   : > { %4034 = vmatmul.mubr.msk.f32.vlgmr.msra.gmra.mxu1 %vm819_vm1, %v719_v1 }
 0x222   : > { %4037 = vmatpush3.xpose.msk.msra.mxu1 %vm819_vm1, %v752_v4  ;;  %4038 = vmatprep.mubr.msk.f32.mxu1 %vm4662_vm0, %v4661_v0 }
 0x223   : > { %v723_v5 = vpop.permute.xlu1 %722  ;;  %4041 = vmatprep.subr.mxu1 %v4661_v0 }
 0x224   : > { %v754_v6 = vpop.permute.xlu0 %753 }
 0x225   : > { %4039 = vmatmul.mubr.msk.f32.vlgmr.msra.gmra.mxu1 %vm819_vm1, %v721_v3 }
 0x226   : > { %4042 = vmatpush3.xpose.msk.msra.mxu1 %vm819_vm1, %v754_v6  ;;  %4043 = vmatprep.mubr.msk.f32.mxu1 %vm4662_vm0, %v4661_v0 }
 0x227   : > { %v725_v7 = vpop.permute.xlu1 %724  ;;  %4046 = vmatprep.subr.mxu1 %v4661_v0 }
 0x228   : > { %v756_v8 = vpop.permute.xlu0 %755 }
 0x229   : > { %4044 = vmatmul.mubr.msk.f32.vlgmr.msra.gmra.mxu1 %vm819_vm1, %v723_v5 }
 0x22a   : > { %4047 = vmatpush3.xpose.msk.msra.mxu1 %vm819_vm1, %v756_v8  ;;  %4048 = vmatprep.mubr.msk.f32.mxu1 %vm4662_vm0, %v4661_v0 }
 0x22b   : > { %v727_v9 = vpop.permute.xlu1 %726  ;;  %4051 = vmatprep.subr.mxu1 %v4661_v0 }
 0x22c   : > { %v758_v10 = vpop.permute.xlu0 %757 }
 0x22d   : > { %4049 = vmatmul.mubr.msk.f32.vlgmr.msra.gmra.mxu1 %vm819_vm1, %v725_v7 }
 0x22e   : > { %4052 = vmatpush3.xpose.msk.msra.mxu1 %vm819_vm1, %v758_v10  ;;  %4053 = vmatprep.mubr.msk.f32.mxu1 %vm4662_vm0, %v4661_v0 }
 0x22f   : > { %v729_v11 = vpop.permute.xlu1 %728  ;;  %4056 = vmatprep.subr.mxu1 %v4661_v0 }
 0x230   : > { %v760_v12 = vpop.permute.xlu0 %759 }
 0x231   : > { %4054 = vmatmul.mubr.msk.f32.vlgmr.msra.gmra.mxu1 %vm819_vm1, %v727_v9 }
 0x232   : > { %4057 = vmatpush3.xpose.msk.msra.mxu1 %vm819_vm1, %v760_v12  ;;  %4058 = vmatprep.mubr.msk.f32.mxu1 %vm4662_vm0, %v4661_v0 }
 0x233   : > { %v731_v13 = vpop.permute.xlu1 %730  ;;  %4061 = vmatprep.subr.mxu1 %v4661_v0 }
 0x234   : > { %v762_v14 = vpop.permute.xlu0 %761 }
 0x235   : > { %4059 = vmatmul.mubr.msk.f32.vlgmr.msra.gmra.mxu1 %vm819_vm1, %v729_v11 }
 0x236   : > { %4062 = vmatpush3.xpose.msk.msra.mxu1 %vm819_vm1, %v762_v14  ;;  %4063 = vmatprep.mubr.msk.f32.mxu1 %vm4662_vm0, %v4661_v0 }
 0x237   : > { %v733_v15 = vpop.permute.xlu1 %732  ;;  %4066 = vmatprep.subr.mxu1 %v4661_v0 }
 0x238   : > { %v764_v16 = vpop.permute.xlu0 %763 }
 0x239   : > { %4064 = vmatmul.mubr.msk.f32.vlgmr.msra.gmra.mxu1 %vm819_vm1, %v731_v13 }
 0x23a   : > { %4067 = vmatpush3.xpose.msk.msra.mxu1 %vm819_vm1, %v764_v16  ;;  %4068 = vmatprep.mubr.msk.f32.mxu1 %vm4662_vm0, %v4661_v0 }
 0x23b   : > { %v735_v17 = vpop.permute.xlu1 %734  ;;  %4071 = vmatprep.subr.mxu1 %v4661_v0 }
 0x23c   : > { %v766_v18 = vpop.permute.xlu0 %765 }
 0x23d   : > { %4069 = vmatmul.mubr.msk.f32.vlgmr.msra.gmra.mxu1 %vm819_vm1, %v733_v15 }
 0x23e   : > { %4072 = vmatpush3.xpose.msk.msra.mxu1 %vm819_vm1, %v766_v18  ;;  %4073 = vmatprep.mubr.msk.f32.mxu1 %vm4662_vm0, %v4661_v0 }
 0x23f   : > { %4076 = vmatprep.subr.mxu1 %v4661_v0  ;;  %v737_v19 = vpop.permute.xlu1 %736 }
 0x240   : > { %v768_v20 = vpop.permute.xlu0 %767 }
 0x241   : > { %4074 = vmatmul.mubr.msk.f32.vlgmr.msra.gmra.mxu1 %vm819_vm1, %v735_v17 }
 0x242   : > { %4077 = vmatpush3.xpose.msk.msra.mxu1 %vm819_vm1, %v768_v20  ;;  %4078 = vmatprep.mubr.msk.f32.mxu1 %vm4662_vm0, %v4661_v0 }
 0x243   : > { %4081 = vmatprep.subr.mxu1 %v4661_v0  ;;  %v739_v22 = vpop.permute.xlu1 %738 }
 0x244   : > { %v770_v21 = vpop.permute.xlu0 %769 }
 0x245   : > { %4079 = vmatmul.mubr.msk.f32.vlgmr.msra.gmra.mxu1 %vm819_vm1, %v737_v19 }
 0x246   : > { %4082 = vmatpush3.xpose.msk.msra.mxu1 %vm819_vm1, %v770_v21  ;;  %4083 = vmatprep.mubr.msk.f32.mxu1 %vm4662_vm0, %v4661_v0 }
 0x247   : > { %4086 = vmatprep.subr.mxu1 %v4661_v0  ;;  %v741_v24 = vpop.permute.xlu1 %740 }
 0x248   : > { %v772_v23 = vpop.permute.xlu0 %771 }
 0x249   : > { %4084 = vmatmul.mubr.msk.f32.vlgmr.msra.gmra.mxu1 %vm819_vm1, %v739_v22 }
 0x24a   : > { %4087 = vmatpush3.xpose.msk.msra.mxu1 %vm819_vm1, %v772_v23  ;;  %4088 = vmatprep.mubr.msk.f32.mxu1 %vm4662_vm0, %v4661_v0 }
 0x24b   : > { %4096 = vmatprep.subr.mxu1 %v4661_v0  ;;  %v775_v25 = vpop.permute.xlu1 %774 }
 0x24c   : > { %v5173_v39 = vpop.permute.xlu0 %777 }
 0x24d   : > { %4089 = vmatmul.mubr.msk.f32.vlgmr.msra.gmra.mxu1 %vm819_vm1, %v741_v24 }
 0x24e   : > { %4098 = vmatprep.mubr.msk.f32.mxu1 %vm4662_vm0, %v4661_v0  ;;  %4097 = vmatpush3.msra.mxu1 %v775_v25 }
 0x24f   : > { %4106 = vmatprep.subr.mxu1 %v4661_v0  ;;  %v5237_v19 = vpop.permute.xlu1 %780 }
 0x250   : > { %v5181_v45 = vpop.permute.xlu0 %792 }
 0x253   : > { %v5239_v20 = vpop.permute.xlu1 %783 }
 0x257   : > { %v5241_v21 = vpop.permute.xlu1 %786 }
 0x25b   : > { %v5245_v22 = vpop.permute.xlu1 %789 }
 0x261   : > { %v890_v26 = vpop.f32.mrf.mxu1 }
 0x262   : > { %v2004_v27 = vsel %vm819_vm1, %v890_v26, -inf }
 0x263   : > { %v4015_v28 = vpop.f32.mrf.mxu1  ;;  %2005 = vmax.xlane.f32.xlu0 %v2004_v27 }
 0x2d5   : > { %v5159_v29 = vpop.f32.mrf.mxu1 }
 0x2d6   : > { %v2007_v30 = vsel %vm819_vm1, %v5159_v29, -inf }
 0x2d7   : > { %v4020_v31 = vpop.f32.mrf.mxu1  ;;  %2008 = vmax.xlane.f32.xlu1 %v2007_v30 }
 0x2d9   : > { %v5163_v32 = vpop.f32.mrf.mxu1 }
 0x2da   : > { %v2010_v33 = vsel %vm819_vm1, %v5163_v32, -inf }
 0x2db   : > { %v4025_v34 = vpop.f32.mrf.mxu1  ;;  %2011 = vmax.xlane.f32.xlu0 %v2010_v33 }
 0x2dd   : > { %v5167_v35 = vpop.f32.mrf.mxu1 }
 0x2de   : > { %v2013_v36 = vsel %vm819_vm1, %v5167_v35, -inf }
 0x2df   : > { %v4030_v37 = vpop.f32.mrf.mxu1  ;;  %2014 = vmax.xlane.f32.xlu0 %v2013_v36 }
 0x2e1   : > { %v5171_v38 = vpop.f32.mrf.mxu1 }
 0x2e2   : > { %v2016_v40 = vsel %vm819_vm1, %v5171_v38, -inf }
 0x2e3   : > { %v4035_v41 = vpop.f32.mrf.mxu1  ;;  %2017 = vmax.xlane.f32.xlu1 %v2016_v40 }
 0x2e5   : > { %v5177_v42 = vpop.f32.mrf.mxu1 }
 0x2e6   : > { %v2019_v43 = vsel %vm819_vm1, %v5177_v42, -inf }
 0x2e7   : > { %v4040_v44 = vpop.f32.mrf.mxu1  ;;  %2020 = vmax.xlane.f32.xlu0 %v2019_v43 }
 0x2e9   : > { %v5183_v46 = vpop.f32.mrf.mxu1 }
 0x2ea   : > { %v2022_v47 = vsel %vm819_vm1, %v5183_v46, -inf }
 0x2eb   : > { %v4045_v48 = vpop.f32.mrf.mxu1  ;;  %2023 = vmax.xlane.f32.xlu1 %v2022_v47 }
 0x2ec   : > { %v2006_v49 = vpop.xlane.xlu0 %2005 }
 0x2ed   : > { %v2052_v50 = vsub.f32 %v890_v26, %v2006_v49  ;;  %v5187_v51 = vpop.f32.mrf.mxu1 }
 0x2ee   : > { %v2025_v52 = vsel %vm819_vm1, %v5187_v51, -inf }
 0x2ef   : > { %v2068_v53 = vmul.f32 1.442695, %v2052_v50  ;;  %v4050_v54 = vpop.f32.mrf.mxu1  ;;  %2026 = vmax.xlane.f32.xlu0 %v2025_v52 }
 0x2f1   : > { %4322 = vpow2.f32 %v2068_v53  ;;  %v5191_v55 = vpop.f32.mrf.mxu1 }
 0x2f2   : > { %v2028_v57 = vsel %vm819_vm1, %v5191_v55, -inf }
 0x2f3   : > { %v4055_v58 = vpop.f32.mrf.mxu1  ;;  %2029 = vmax.xlane.f32.xlu1 %v2028_v57 }
 0x2f5   : > { %v5195_v59 = vpop.f32.mrf.mxu1 }
 0x2f6   : > { %v2031_v60 = vsel %vm819_vm1, %v5195_v59, -inf }
 0x2f7   : > { %v4060_v61 = vpop.f32.mrf.mxu1  ;;  %2032 = vmax.xlane.f32.xlu0 %v2031_v60 }
 0x2f9   : > { %v5199_v62 = vpop.f32.mrf.mxu1 }
 0x2fa   : > { %v2034_v63 = vsel %vm819_vm1, %v5199_v62, -inf }
 0x2fb   : > { %v4065_v1 = vpop.f32.mrf.mxu1  ;;  %2035 = vmax.xlane.f32.xlu1 %v2034_v63 }
 0x2fd   : > { %v5203_v2 = vpop.f32.mrf.mxu1 }
 0x2fe   : > { %v5205_v3 = vpop.eup %4322  ;;  %v2037_v4 = vsel %vm819_vm1, %v5203_v2, -inf }
 0x2ff   : > { %v4070_v5 = vpop.f32.mrf.mxu1  ;;  %2038 = vmax.xlane.f32.xlu0 %v2037_v4  ;;  %v2100_v6 = vsel %vm819_vm1, %v5205_v3, 0.0 }
 0x300   : > { %2101 = vadd.xlane.f32.xlu1 %v2100_v6 }
 0x301   : > { %v5211_v7 = vpop.f32.mrf.mxu1 }
 0x302   : > { %v2040_v8 = vsel %vm819_vm1, %v5211_v7, -inf }
 0x303   : > { %v4075_v9 = vpop.f32.mrf.mxu1 }
 0x304   : > { %2041 = vmax.xlane.f32.xlu1 %v2040_v8 }
 0x305   : > { %v5215_v10 = vpop.f32.mrf.mxu1 }
 0x306   : > { %v2043_v11 = vsel %vm819_vm1, %v5215_v10, -inf }
 0x307   : > { %v4080_v12 = vpop.f32.mrf.mxu1  ;;  %2044 = vmax.xlane.f32.xlu0 %v2043_v11 }
 0x309   : > { %v5219_v13 = vpop.f32.mrf.mxu1 }
 0x30a   : > { %v2046_v14 = vsel %vm819_vm1, %v5219_v13, -inf }
 0x30b   : > { %v4085_v15 = vpop.f32.mrf.mxu1  ;;  %2047 = vmax.xlane.f32.xlu1 %v2046_v14 }
 0x30d   : > { %v5223_v16 = vpop.f32.mrf.mxu1 }
 0x30e   : > { %v2049_v18 = vsel %vm819_vm1, %v5223_v16, -inf }
 0x30f   : > { %v4090_v17 = vpop.f32.mrf.mxu1 }
 0x31c   : > { %795 = vrot.lane.b32.xlu1 %v5052_v56, %s4670_s15 }
 0x31d   : > { %798 = vrot.lane.b32.xlu0 %v5052_v56, %s4671_s17 }
 0x320   : > { %801 = vrot.lane.b32.xlu1 %v5052_v56, %s4672_s20 }
 0x321   : > { %804 = vrot.lane.b32.xlu0 %v5052_v56, %s4673_s21 }
 0x324   : > { %807 = vrot.lane.b32.xlu1 %v5052_v56, %s4674_s14 }
 0x340   : > { %2050 = vmax.xlane.f32.xlu0 %v2049_v18 }
 0x356   : > { %810 = vrot.lane.b32.xlu0 %v5052_v56, %s4675_s18 }
 0x360   : > { %v2009_v23 = vpop.xlane.xlu1 %2008 }
 0x361   : > { %v2053_v24 = vsub.f32 %v5159_v29, %v2009_v23 }
 0x363   : > { %v2070_v25 = vmul.f32 1.442695, %v2053_v24 }
 0x364   : > { %v2012_v26 = vpop.xlane.xlu0 %2011 }
 0x365   : > { %4324 = vpow2.f32 %v2070_v25  ;;  %v2054_v27 = vsub.f32 %v5163_v32, %v2012_v26 }
 0x367   : > { %v2072_v28 = vmul.f32 1.442695, %v2054_v27 }
 0x368   : > { %v2015_v30 = vpop.xlane.xlu0 %2014 }
 0x369   : > { %4326 = vpow2.f32 %v2072_v28  ;;  %v2055_v31 = vsub.f32 %v5167_v35, %v2015_v30 }
 0x36b   : > { %v2074_v33 = vmul.f32 1.442695, %v2055_v31 }
 0x36c   : > { %v2018_v34 = vpop.xlane.xlu1 %2017 }
 0x36d   : > { %4328 = vpow2.f32 %v2074_v33  ;;  %v2056_v36 = vsub.f32 %v5171_v38, %v2018_v34 }
 0x36f   : > { %v2076_v37 = vmul.f32 1.442695, %v2056_v36 }
 0x370   : > { %v2021_v40 = vpop.xlane.xlu0 %2020 }
 0x371   : > { %4330 = vpow2.f32 %v2076_v37  ;;  %v2057_v29 = vsub.f32 %v5177_v42, %v2021_v40 }
 0x372   : > { %v5252_v41 = vpop.eup %4324 }
 0x373   : > { %v2078_v43 = vmul.f32 1.442695, %v2057_v29  ;;  %v2103_v32 = vsel %vm819_vm1, %v5252_v41, 0.0 }
 0x374   : > { %v2024_v44 = vpop.xlane.xlu1 %2023 }
 0x375   : > { %4332 = vpow2.f32 %v2078_v43  ;;  %v2058_v35 = vsub.f32 %v5183_v46, %v2024_v44  ;;  %2104 = vadd.xlane.f32.xlu0 %v2103_v32 }
 0x376   : > { %v5257_v47 = vpop.eup %4326 }
 0x377   : > { %v2080_v48 = vmul.f32 1.442695, %v2058_v35  ;;  %v2106_v38 = vsel %vm819_vm1, %v5257_v47, 0.0 }
 0x378   : > { %v2027_v49 = vpop.xlane.xlu0 %2026  ;;  %2107 = vadd.xlane.f32.xlu1 %v2106_v38 }
 0x379   : > { %4334 = vpow2.f32 %v2080_v48  ;;  %v2059_v42 = vsub.f32 %v5187_v51, %v2027_v49 }
 0x37a   : > { %v5262_v50 = vpop.eup %4328 }
 0x37b   : > { %v2082_v52 = vmul.f32 1.442695, %v2059_v42  ;;  %v2109_v53 = vsel %vm819_vm1, %v5262_v50, 0.0 }
 0x37c   : > { %2110 = vadd.xlane.f32.xlu0 %v2109_v53  ;;  %v2030_v46 = vpop.xlane.xlu1 %2029 }
 0x37d   : > { %4336 = vpow2.f32 %v2082_v52  ;;  %v2060_v54 = vsub.f32 %v5191_v55, %v2030_v46 }
 0x37e   : > { %v5267_v57 = vpop.eup %4330 }
 0x37f   : > { %v2084_v58 = vmul.f32 1.442695, %v2060_v54  ;;  %v2112_v60 = vsel %vm819_vm1, %v5267_v57, 0.0 }
 0x380   : > { %v2033_v61 = vpop.xlane.xlu0 %2032  ;;  %2113 = vadd.xlane.f32.xlu1 %v2112_v60 }
 0x381   : > { %4338 = vpow2.f32 %v2084_v58  ;;  %v2061_v51 = vsub.f32 %v5195_v59, %v2033_v61 }
 0x382   : > { %v5272_v63 = vpop.eup %4332 }
 0x383   : > { %v2086_v1 = vmul.f32 1.442695, %v2061_v51  ;;  %v2115_v4 = vsel %vm819_vm1, %v5272_v63, 0.0 }
 0x384   : > { %2116 = vadd.xlane.f32.xlu0 %v2115_v4  ;;  %v2036_v5 = vpop.xlane.xlu1 %2035 }
 0x385   : > { %4340 = vpow2.f32 %v2086_v1  ;;  %v2062_v55 = vsub.f32 %v5199_v62, %v2036_v5 }
 0x386   : > { %v5277_v6 = vpop.eup %4334 }
 0x387   : > { %v2088_v8 = vmul.f32 1.442695, %v2062_v55  ;;  %v2118_v9 = vsel %vm819_vm1, %v5277_v6, 0.0 }
 0x388   : > { %v2039_v11 = vpop.xlane.xlu0 %2038  ;;  %2119 = vadd.xlane.f32.xlu1 %v2118_v9 }
 0x389   : > { %4342 = vpow2.f32 %v2088_v8  ;;  %v2063_v59 = vsub.f32 %v5203_v2, %v2039_v11  ;;  %v2102_v12 = vpop.xlane.xlu1 %2101 }
 0x38a   : > { %v5282_v14 = vpop.eup %4336  ;;  %4344 = vrcp.f32 %v2102_v12 }
 0x38b   : > { %v2090_v15 = vmul.f32 1.442695, %v2063_v59  ;;  %v2121_v17 = vsel %vm819_vm1, %v5282_v14, 0.0 }
 0x38c   : > { %2122 = vadd.xlane.f32.xlu0 %v2121_v17 }
 0x38d   : > { %4346 = vpow2.f32 %v2090_v15  ;;  %v2042_v62 = vpop.xlane.xlu1 %2041 }
 0x38e   : > { %v5286_v18 = vpop.eup %4338  ;;  %v2064_v23 = vsub.f32 %v5211_v7, %v2042_v62 }
 0x38f   : > { %v2124_v24 = vsel %vm819_vm1, %v5286_v18, 0.0 }
 0x390   : > { %v2092_v25 = vmul.f32 1.442695, %v2064_v23  ;;  %v2045_v2 = vpop.xlane.xlu0 %2044  ;;  %2125 = vadd.xlane.f32.xlu1 %v2124_v24 }
 0x391   : > { %v2065_v26 = vsub.f32 %v5215_v10, %v2045_v2 }
 0x392   : > { %v5292_v27 = vpop.eup %4340  ;;  %4348 = vpow2.f32 %v2092_v25 }
 0x393   : > { %v2094_v28 = vmul.f32 1.442695, %v2065_v26  ;;  %v2127_v30 = vsel %vm819_vm1, %v5292_v27, 0.0 }
 0x394   : > { %2128 = vadd.xlane.f32.xlu0 %v2127_v30  ;;  %v2048_v31 = vpop.xlane.xlu1 %2047  ;;  %v5325_v35 = vpop.permute.xlu0 %798 }
 0x395   : > { %4350 = vpow2.f32 %v2094_v28  ;;  %v2066_v7 = vsub.f32 %v5219_v13, %v2048_v31 }
 0x396   : > { %v5297_v33 = vpop.eup %4342 }
 0x397   : > { %v4345_v34 = vpop.eup %4344  ;;  %v2096_v36 = vmul.f32 1.442695, %v2066_v7  ;;  %v2130_v37 = vsel %vm819_vm1, %v5297_v33, 0.0 }
 0x398   : > { %2131 = vadd.xlane.f32.xlu1 %v2130_v37  ;;  %v2149_v10 = vmul.f32 %v4345_v34, %v5205_v3  ;;  %v5327_v48 = vpop.permute.xlu0 %804  ;;  %v796_v46 = vpop.permute.xlu1 %795 }
 0x399   : > { %4352 = vpow2.f32 %v2096_v36 }
 0x39a   : > { %v5302_v40 = vpop.eup %4346  ;;  %4094 = vmatmul.mubr.msk.f32.vlgmr.msra.gmra.mxu0 %vm819_vm1, %v2149_v10 }
 0x39b   : > { %4102 = vmatpush3.msra.mxu0 %v5173_v39  ;;  %v2133_v13 = vsel %vm819_vm1, %v5302_v40, 0.0  ;;  %4103 = vmatprep.mubr.msk.f32.mxu0 %vm4662_vm0, %v4661_v0 }
 0x39c   : > { %2134 = vadd.xlane.f32.xlu0 %v2133_v13  ;;  %4111 = vmatprep.subr.mxu0 %v4661_v0  ;;  %v5336_v54 = vpop.permute.xlu1 %801 }
 0x39f   : > { %v5311_v29 = vpop.eup %4348 }
 0x3a0   : > { %v2136_v3 = vsel %vm819_vm1, %v5311_v29, 0.0  ;;  %v5340_v60 = vpop.permute.xlu1 %807 }
 0x3a1   : > { %2137 = vadd.xlane.f32.xlu1 %v2136_v3 }
 0x3a2   : > { %v5315_v43 = vpop.eup %4350 }
 0x3a3   : > { %v2139_v39 = vsel %vm819_vm1, %v5315_v43, 0.0 }
 0x3a4   : > { %2140 = vadd.xlane.f32.xlu0 %v2139_v39 }
 0x3a6   : > { %v5319_v32 = vpop.eup %4352 }
 0x3a7   : > { %v2142_v44 = vsel %vm819_vm1, %v5319_v32, 0.0 }
 0x3a8   : > { %2143 = vadd.xlane.f32.xlu0 %v2142_v44 }
 0x3b2   : > { %813 = vrot.lane.b32.xlu1 %v5052_v56, %s4676_s23 }
 0x3c9   : > { %v2051_v38 = vpop.xlane.xlu0 %2050 }
 0x3ca   : > { %v2067_v49 = vsub.f32 %v5223_v16, %v2051_v38 }
 0x3cc   : > { %v2098_v42 = vmul.f32 1.442695, %v2067_v49 }
 0x3cd   : > { %v5338_v58 = vpop.permute.xlu0 %810 }
 0x3ce   : > { %4354 = vpow2.f32 %v2098_v42 }
 0x3db   : > { %v5330_v52 = vpop.eup %4354 }
 0x3dc   : > { %v2145_v53 = vsel %vm819_vm1, %v5330_v52, 0.0 }
 0x3dd   : > { %2146 = vadd.xlane.f32.xlu0 %v2145_v53 }
 0x3f3   : > { %816 = vrot.lane.b32.xlu0 %v5052_v56, %s4677_s1 }
 0x3fe   : > { %v2105_v61 = vpop.xlane.xlu0 %2104 }
 0x3ff   : > { %4356 = vrcp.f32 %v2105_v61 }
 0x401   : > { %v2108_v16 = vpop.xlane.xlu1 %2107 }
 0x402   : > { %4358 = vrcp.f32 %v2108_v16 }
 0x405   : > { %v2111_v51 = vpop.xlane.xlu0 %2110 }
 0x406   : > { %4360 = vrcp.f32 %v2111_v51 }
 0x409   : > { %v2114_v1 = vpop.xlane.xlu1 %2113 }
 0x40a   : > { %4362 = vrcp.f32 %v2114_v1 }
 0x40c   : > { %v4357_v4 = vpop.eup %4356 }
 0x40d   : > { %v2117_v5 = vpop.xlane.xlu0 %2116  ;;  %v2151_v55 = vmul.f32 %v4357_v4, %v5252_v41 }
 0x40e   : > { %4364 = vrcp.f32 %v2117_v5 }
 0x40f   : > { %v4359_v56 = vpop.eup %4358  ;;  %4099 = vmatmul.mubr.msk.f32.vlgmr.msra.gmra.mxu1 %vm819_vm1, %v2151_v55 }
 0x410   : > { %4107 = vmatpush3.msra.mxu1 %v5237_v19  ;;  %v2153_v8 = vmul.f32 %v4359_v56, %v5257_v47  ;;  %4108 = vmatprep.mubr.msk.f32.mxu1 %vm4662_vm0, %v4661_v0  ;;  %v3455_v56 = vld [vmem:[#allocation14 + $0x78] sm:$0xff] }
 0x411   : > { %v2120_v9 = vpop.xlane.xlu1 %2119  ;;  %4116 = vmatprep.subr.mxu1 %v4661_v0 }
 0x412   : > { %4366 = vrcp.f32 %v2120_v9  ;;  %4104 = vmatmul.mubr.msk.f32.vlgmr.msra.gmra.mxu0 %vm819_vm1, %v2153_v8  ;;  %v3454_v8 = vld [vmem:[#allocation14 + $0x70] sm:$0xff] }
 0x413   : > { %v4361_v11 = vpop.eup %4360  ;;  %4112 = vmatpush3.msra.mxu0 %v5239_v20  ;;  %4113 = vmatprep.mubr.msk.f32.mxu0 %vm4662_vm0, %v4661_v0 }
 0x414   : > { %v2155_v41 = vmul.f32 %v4361_v11, %v5262_v50  ;;  %4121 = vmatprep.subr.mxu0 %v4661_v0  ;;  %v3453_v11 = vld [vmem:[#allocation14 + $0x68] sm:$0xff] }
 0x415   : > { %v2123_v19 = vpop.xlane.xlu0 %2122 }
 0x416   : > { %4368 = vrcp.f32 %v2123_v19  ;;  %4109 = vmatmul.mubr.msk.f32.vlgmr.msra.gmra.mxu1 %vm819_vm1, %v2155_v41  ;;  %v3452_v41 = vld [vmem:[#allocation14 + $0x60] sm:$0xff] }
 0x417   : > { %v4363_v47 = vpop.eup %4362  ;;  %4117 = vmatpush3.msra.mxu1 %v5241_v21  ;;  %4118 = vmatprep.mubr.msk.f32.mxu1 %vm4662_vm0, %v4661_v0 }
 0x418   : > { %v2157_v59 = vmul.f32 %v4363_v47, %v5267_v57  ;;  %4126 = vmatprep.subr.mxu1 %v4661_v0  ;;  %v3451_v47 = vld [vmem:[#allocation14 + $0x58] sm:$0xff] }
 0x419   : > { %v2126_v20 = vpop.xlane.xlu1 %2125 }
 0x41a   : > { %4370 = vrcp.f32 %v2126_v20  ;;  %4114 = vmatmul.mubr.msk.f32.vlgmr.msra.gmra.mxu0 %vm819_vm1, %v2157_v59 }
 0x41b   : > { %v4365_v50 = vpop.eup %4364  ;;  %4122 = vmatpush3.msra.mxu0 %v5245_v22  ;;  %4123 = vmatprep.mubr.msk.f32.mxu0 %vm4662_vm0, %v4661_v0 }
 0x41c   : > { %v2159_v12 = vmul.f32 %v4365_v50, %v5272_v63  ;;  %4131 = vmatprep.subr.mxu0 %v4661_v0  ;;  %v3450_v50 = vld [vmem:[#allocation14 + $0x50] sm:$0xff] }
 0x41d   : > { %v2129_v21 = vpop.xlane.xlu0 %2128 }
 0x41e   : > { %4372 = vrcp.f32 %v2129_v21  ;;  %4119 = vmatmul.mubr.msk.f32.vlgmr.msra.gmra.mxu1 %vm819_vm1, %v2159_v12  ;;  %v3449_v21 = vld [vmem:[#allocation14 + $0x48] sm:$0xff] }
 0x41f   : > { %v4367_v57 = vpop.eup %4366  ;;  %4127 = vmatpush3.msra.mxu1 %v5181_v45  ;;  %4128 = vmatprep.mubr.msk.f32.mxu1 %vm4662_vm0, %v4661_v0 }
 0x420   : > { %v2161_v15 = vmul.f32 %v4367_v57, %v5277_v6  ;;  %4136 = vmatprep.subr.mxu1 %v4661_v0 }
 0x421   : > { %v2132_v22 = vpop.xlane.xlu1 %2131 }
 0x422   : > { %4374 = vrcp.f32 %v2132_v22  ;;  %4124 = vmatmul.mubr.msk.f32.vlgmr.msra.gmra.mxu0 %vm819_vm1, %v2161_v15  ;;  %v3448_v15 = vld [vmem:[#allocation14 + $0x40] sm:$0xff] }
 0x423   : > { %v4369_v63 = vpop.eup %4368  ;;  %4132 = vmatpush3.msra.mxu0 %v796_v46  ;;  %4133 = vmatprep.mubr.msk.f32.mxu0 %vm4662_vm0, %v4661_v0 }
 0x424   : > { %v2163_v17 = vmul.f32 %v4369_v63, %v5282_v14  ;;  %4141 = vmatprep.subr.mxu0 %v4661_v0  ;;  %v3447_v63 = vld [vmem:[#allocation14 + $0x38] sm:$0xff] }
 0x425   : > { %v2135_v45 = vpop.xlane.xlu0 %2134 }
 0x426   : > { %4376 = vrcp.f32 %v2135_v45  ;;  %4129 = vmatmul.mubr.msk.f32.vlgmr.msra.gmra.mxu1 %vm819_vm1, %v2163_v17  ;;  %v3446_v17 = vld [vmem:[#allocation14 + $0x30] sm:$0xff]  ;;  %v3445_v45 = vld [vmem:[#allocation14 + $0x28] sm:$0xff] }
 0x427   : > { %v4371_v6 = vpop.eup %4370  ;;  %4137 = vmatpush3.msra.mxu1 %v5325_v35  ;;  %4138 = vmatprep.mubr.msk.f32.mxu1 %vm4662_vm0, %v4661_v0 }
 0x428   : > { %v2165_v62 = vmul.f32 %v4371_v6, %v5286_v18  ;;  %4146 = vmatprep.subr.mxu1 %v4661_v0  ;;  %v3444_v6 = vld [vmem:[#allocation14 + $0x20] sm:$0xff] }
 0x42a   : > { %v2138_v23 = vpop.xlane.xlu1 %2137  ;;  %4134 = vmatmul.mubr.msk.f32.vlgmr.msra.gmra.mxu0 %vm819_vm1, %v2165_v62  ;;  %v3443_v62 = vld [vmem:[#allocation14 + $0x18] sm:$0xff] }
 0x42b   : > { %v4373_v14 = vpop.eup %4372  ;;  %4378 = vrcp.f32 %v2138_v23  ;;  %4142 = vmatpush3.msra.mxu0 %v5336_v54  ;;  %4143 = vmatprep.mubr.msk.f32.mxu0 %vm4662_vm0, %v4661_v0  ;;  %v3442_v23 = vld [vmem:[#allocation14 + $0x10] sm:$0xff] }
 0x42c   : > { %v2167_v24 = vmul.f32 %v4373_v14, %v5292_v27  ;;  %4151 = vmatprep.subr.mxu0 %v4661_v0  ;;  %v3441_v14 = vld [vmem:[#allocation14 + $0x8] sm:$0xff] }
 0x42d   : > { %v2141_v25 = vpop.xlane.xlu0 %2140 }
 0x42e   : > { %4380 = vrcp.f32 %v2141_v25  ;;  %4139 = vmatmul.mubr.msk.f32.vlgmr.msra.gmra.mxu1 %vm819_vm1, %v2167_v24  ;;  %v3440_v24 = vld [vmem:[#allocation14] sm:$0xff] }
 0x42f   : > { %v4375_v18 = vpop.eup %4374  ;;  %4147 = vmatpush3.msra.mxu1 %v5327_v48  ;;  %4148 = vmatprep.mubr.msk.f32.mxu1 %vm4662_vm0, %v4661_v0 }
 0x430   : > { %v2169_v2 = vmul.f32 %v4375_v18, %v5297_v33  ;;  %4156 = vmatprep.subr.mxu1 %v4661_v0  ;;  %v814_v33 = vpop.permute.xlu1 %813 }
 0x431   : > { %v2144_v26 = vpop.xlane.xlu0 %2143 }
 0x432   : > { %4382 = vrcp.f32 %v2144_v26  ;;  %4144 = vmatmul.mubr.msk.f32.vlgmr.msra.gmra.mxu0 %vm819_vm1, %v2169_v2 }
 0x433   : > { %v4377_v27 = vpop.eup %4376  ;;  %4152 = vmatpush3.msra.mxu0 %v5340_v60  ;;  %4153 = vmatprep.mubr.msk.f32.mxu0 %vm4662_vm0, %v4661_v0 }
 0x434   : > { %v2171_v28 = vmul.f32 %v4377_v27, %v5302_v40  ;;  %4161 = vmatprep.subr.mxu0 %v4661_v0 }
 0x436   : > { %4149 = vmatmul.mubr.msk.f32.vlgmr.msra.gmra.mxu1 %vm819_vm1, %v2171_v28 }
 0x437   : > { %4157 = vmatpush3.msra.mxu1 %v5338_v58  ;;  %4158 = vmatprep.mubr.msk.f32.mxu1 %vm4662_vm0, %v4661_v0 }
 0x438   : > { %v4379_v30 = vpop.eup %4378  ;;  %4166 = vmatprep.subr.mxu1 %v4661_v0 }
 0x439   : > { %v2173_v31 = vmul.f32 %v4379_v30, %v5311_v29 }
 0x43b   : > { %v4381_v7 = vpop.eup %4380  ;;  %4154 = vmatmul.mubr.msk.f32.vlgmr.msra.gmra.mxu0 %vm819_vm1, %v2173_v31 }
 0x43c   : > { %4162 = vmatpush3.msra.mxu0 %v814_v33  ;;  %v2175_v34 = vmul.f32 %v4381_v7, %v5315_v43  ;;  %4163 = vmatprep.mubr.msk.f32.mxu0 %vm4662_vm0, %v4661_v0 }
 0x43d   : > { %4171 = vmatprep.subr.mxu0 %v4661_v0 }
 0x43e   : > { %4159 = vmatmul.mubr.msk.f32.vlgmr.msra.gmra.mxu1 %vm819_vm1, %v2175_v34 }
 0x43f   : > { %v4383_v36 = vpop.eup %4382  ;;  %4168 = vmatprep.mubr.msk.f32.mxu1 %vm4662_vm0, %v4661_v0 }
 0x440   : > { %v2177_v37 = vmul.f32 %v4383_v36, %v5319_v32 }
 0x442   : > { %4164 = vmatmul.mubr.msk.f32.vlgmr.msra.gmra.mxu0 %vm819_vm1, %v2177_v37 }
 0x443   : > { %4203 = vmatprep.mubr.msk.f32.mxu0 %vm4662_vm0, %v4661_v0  ;;  %4172 = vmatpush3.msra.mxu0 %v3455_v56  ;;  %vm3437_vm0 = vcmask 1048512  }
 0x444   : > { %4173 = vmatprep.subr.mxu0 %v4661_v0 }
 0x445   : > { %4174 = vmatpush3.msra.mxu0 %v3454_v8 }
 0x446   : > { %4175 = vmatprep.subr.mxu0 %v4661_v0 }
 0x447   : > { %4176 = vmatpush3.msra.mxu0 %v3453_v11 }
 0x448   : > { %4177 = vmatprep.subr.mxu0 %v4661_v0 }
 0x449   : > { %4178 = vmatpush3.msra.mxu0 %v3452_v41 }
 0x44a   : > { %4179 = vmatprep.subr.mxu0 %v4661_v0 }
 0x44b   : > { %4180 = vmatpush3.msra.mxu0 %v3451_v47 }
 0x44c   : > { %4181 = vmatprep.subr.mxu0 %v4661_v0 }
 0x44d   : > { %4182 = vmatpush3.msra.mxu0 %v3450_v50 }
 0x44e   : > { %4183 = vmatprep.subr.mxu0 %v4661_v0 }
 0x44f   : > { %4184 = vmatpush3.msra.mxu0 %v3449_v21 }
 0x450   : > { %4185 = vmatprep.subr.mxu0 %v4661_v0 }
 0x451   : > { %4186 = vmatpush3.msra.mxu0 %v3448_v15 }
 0x452   : > { %4187 = vmatprep.subr.mxu0 %v4661_v0 }
 0x453   : > { %4188 = vmatpush3.msra.mxu0 %v3447_v63 }
 0x454   : > { %4189 = vmatprep.subr.mxu0 %v4661_v0 }
 0x455   : > { %4190 = vmatpush3.msra.mxu0 %v3446_v17 }
 0x456   : > { %4191 = vmatprep.subr.mxu0 %v4661_v0 }
 0x457   : > { %4192 = vmatpush3.msra.mxu0 %v3445_v45 }
 0x458   : > { %4193 = vmatprep.subr.mxu0 %v4661_v0 }
 0x459   : > { %4194 = vmatpush3.msra.mxu0 %v3444_v6 }
 0x45a   : > { %v2249_v10 = vpop.f32.mrf.mxu0  ;;  %4195 = vmatprep.subr.mxu0 %v4661_v0 }
 0x45b   : > { %3348 = vst.msk [vmem:[#allocation2] sm:$0xff] %vm819_vm1, %v2249_v10  ;;  %4196 = vmatpush3.msra.mxu0 %v3443_v62 }
 0x45c   : > { %v4095_v40 = vpop.f32.mrf.mxu0  ;;  %4197 = vmatprep.subr.mxu0 %v4661_v0 }
 0x45d   : > { %4198 = vmatpush3.msra.mxu0 %v3442_v23 }
 0x45e   : > { %4199 = vmatprep.subr.mxu0 %v4661_v0 }
 0x45f   : > { %4200 = vmatpush3.msra.mxu0 %v3441_v14 }
 0x460   : > { %4201 = vmatprep.subr.mxu0 %v4661_v0 }
 0x461   : > { %4202 = vmatpush3.msra.mxu0 %v3440_v24 }
 0x466   : > { %v2147_v13 = vpop.xlane.xlu0 %2146 }
 0x467   : > { %4384 = vrcp.f32 %v2147_v13 }
 0x46a   : > { %v817_v29 = vpop.permute.xlu0 %816 }
 0x46b   : > { %4167 = vmatpush3.msra.mxu1 %v817_v29 }
 0x474   : > { %v4385_v3 = vpop.eup %4384 }
 0x475   : > { %v2179_v43 = vmul.f32 %v4385_v3, %v5330_v52  ;;  %v3769_v3 = vld [vmem:[%s5505_s7] ss:$0 sm:$0xff] }
 0x477   : > { %4169 = vmatmul.mubr.msk.f32.vlgmr.msra.gmra.mxu1 %vm819_vm1, %v2179_v43 }
 0x4cf   : > { %v2322_v39 = vpop.f32.mrf.mxu1 }
 0x4d0   : > { %3350 = vrot.lane.b32.xlu1 %v2322_v39, %s4677_s1 }
 0x4d1   : > { %v4100_v32 = vpop.f32.mrf.mxu1 }
 0x4d2   : > { %v2395_v44 = vpop.f32.mrf.mxu0 }
 0x4d3   : > { %3356 = vrot.lane.b32.xlu0 %v2395_v44, %s4676_s23 }
 0x4d4   : > { %v4105_v35 = vpop.f32.mrf.mxu0 }
 0x4d6   : > { %v2468_v48 = vpop.f32.mrf.mxu1 }
 0x4d7   : > { %3362 = vrot.lane.b32.xlu1 %v2468_v48, %s4675_s18 }
 0x4d8   : > { %v4110_v38 = vpop.f32.mrf.mxu1 }
 0x4da   : > { %v2541_v49 = vpop.f32.mrf.mxu0 }
 0x4db   : > { %3368 = vrot.lane.b32.xlu0 %v2541_v49, %s4674_s14 }
 0x4dc   : > { %v4115_v42 = vpop.f32.mrf.mxu0 }
 0x4de   : > { %v2614_v53 = vpop.f32.mrf.mxu1 }
 0x4df   : > { %3374 = vrot.lane.b32.xlu1 %v2614_v53, %s4673_s21 }
 0x4e0   : > { %v4120_v52 = vpop.f32.mrf.mxu1 }
 0x4e2   : > { %v2687_v46 = vpop.f32.mrf.mxu0 }
 0x4e3   : > { %3380 = vrot.lane.b32.xlu0 %v2687_v46, %s4672_s20 }
 0x4e4   : > { %v4125_v54 = vpop.f32.mrf.mxu0 }
 0x4e6   : > { %v2760_v58 = vpop.f32.mrf.mxu1 }
 0x4e7   : > { %3386 = vrot.lane.b32.xlu1 %v2760_v58, %s4671_s17 }
 0x4e8   : > { %v4130_v60 = vpop.f32.mrf.mxu1 }
 0x4ea   : > { %v2833_v61 = vpop.f32.mrf.mxu0 }
 0x4eb   : > { %3392 = vrot.lane.b32.xlu0 %v2833_v61, %s4670_s15 }
 0x4ec   : > { %v4135_v16 = vpop.f32.mrf.mxu0 }
 0x4ee   : > { %v2906_v51 = vpop.f32.mrf.mxu1 }
 0x4ef   : > { %3398 = vrot.lane.b32.xlu1 %v2906_v51, %s4669_s30  ;;  %s4678_s30 = smov [#allocation15]  }
 0x4f0   : > { %v4140_v1 = vpop.f32.mrf.mxu1  ;;  %s4578_s11 = sshll.u32 %s4678_s30, 4  ;;  %s4579_s11 = int_to_ptr.vmem [resolvable:$false] %s4578_s11 }
 0x4f1   : > { %s4580_s25 = scalar_lea.vmem %s4579_s11, 256 }
 0x4f2   : > { %v2979_v4 = vpop.f32.mrf.mxu0 }
 0x4f3   : > { %3404 = vrot.lane.b32.xlu0 %v2979_v4, %s4668_s26 }
 0x4f4   : > { %v4145_v5 = vpop.f32.mrf.mxu0 }
 0x4f6   : > { %v3052_v55 = vpop.f32.mrf.mxu1 }
 0x4f7   : > { %3410 = vrot.lane.b32.xlu1 %v3052_v55, %s4667_s24  ;;  %s3535_s24 = scalar_lea.sflag [#allocation5], %s4937_s0 }
 0x4f8   : > { %v4150_v9 = vpop.f32.mrf.mxu1 }
 0x4fb   : > { %v3125_v19 = vpop.f32.mrf.mxu0 }
 0x4fc   : > { %3416 = vrot.lane.b32.xlu0 %v3125_v19, %s4666_s9  ;;  %s5461_s9 = scalar_lea.hbm %s5506_s8, %s3771_s22 }
 0x4fd   : > { %v4155_v59 = vpop.f32.mrf.mxu0 }
 0x4fe   : > { %v3198_v20 = vpop.f32.mrf.mxu1 }
 0x4ff   : > { %3422 = vrot.lane.b32.xlu1 %v3198_v20, %s4665_s19 }
 0x500   : > { %v4160_v12 = vpop.f32.mrf.mxu1 }
 0x502   : > { %v3271_v57 = vpop.f32.mrf.mxu0 }
 0x503   : > { %3428 = vrot.lane.b32.xlu0 %v3271_v57, %s4663_s13  ;;  %s3548_s13 = sshll.u32 %s449_s3, 4  ;;  %s3549_s13 = int_to_ptr.vmem [resolvable:$true] %s3548_s13 }
 0x504   : > { %v4165_v22 = vpop.f32.mrf.mxu0  ;;  %s4574_s26 = scalar_lea.vmem %s3549_s13, 128  ;;  %p4581_p11 = scmp.lt.s32.totalorder %s3549_s13, %s4579_s11 }
 0x505   : > { %p4575_p5 = scmp.ne.s32.totalorder %s3549_s13, %s4574_s26  ;;  %p4582_p0 = scmp.lt.s32.totalorder %s4580_s25, %s4574_s26 }
 0x507   : > { %p4576_p8 = pnand %p4575_p5, %p5557_p1  ;;  %p4583_p4 = por %p4582_p0, %p4581_p11 }
 0x509   : > { %p4577_p10 = pneg %p4576_p8 }
 0x50b   : > { %p4584_p7 = pnand %p4583_p4, %p4577_p10 }
 0x537   : > { %v3344_v25 = vpop.f32.mrf.mxu1 }
 0x538   : > { %3434 = vrot.lane.b32.xlu1 %v3344_v25, %s4664_s10 }
 0x539   : > { %v4170_v18 = vpop.f32.mrf.mxu1 }
 0x542   : > { %v3351_v2 = vpop.permute.xlu1 %3350 }
 0x543   : > { %3354 = vst.msk [vmem:[#allocation2] sm:$0xff] %vm3353_vm2, %v3351_v2 }
 0x545   : > { %v3357_v26 = vpop.permute.xlu0 %3356 }
 0x546   : > { %3360 = vst.msk [vmem:[#allocation2] sm:$0xff] %vm3359_vm3, %v3357_v26 }
 0x549   : > { %v3363_v27 = vpop.permute.xlu1 %3362 }
 0x54a   : > { %3366 = vst.msk [vmem:[#allocation2] sm:$0xff] %vm3365_vm4, %v3363_v27 }
 0x54d   : > { %v3369_v28 = vpop.permute.xlu0 %3368 }
 0x54e   : > { %3372 = vst.msk [vmem:[#allocation2] sm:$0xff] %vm3371_vm5, %v3369_v28 }
 0x551   : > { %v3375_v30 = vpop.permute.xlu1 %3374 }
 0x552   : > { %3378 = vst.msk [vmem:[#allocation2] sm:$0xff] %vm3377_vm6, %v3375_v30 }
 0x555   : > { %v3381_v0 = vpop.permute.xlu0 %3380 }
 0x556   : > { %3384 = vst.msk [vmem:[#allocation2] sm:$0xff] %vm3383_vm7, %v3381_v0 }
 0x559   : > { %v3387_v31 = vpop.permute.xlu1 %3386 }
 0x55a   : > { %3390 = vst.msk [vmem:[#allocation2] sm:$0xff] %vm3389_vm8, %v3387_v31 }
 0x55d   : > { %v3393_v7 = vpop.permute.xlu0 %3392 }
 0x55e   : > { %3396 = vst.msk [vmem:[#allocation2] sm:$0xff] %vm3395_vm9, %v3393_v7 }
 0x561   : > { %v3399_v33 = vpop.permute.xlu1 %3398 }
 0x562   : > { %3402 = vst.msk [vmem:[#allocation2] sm:$0xff] %vm3401_vm10, %v3399_v33 }
 0x565   : > { %v3405_v34 = vpop.permute.xlu0 %3404 }
 0x566   : > { %3408 = vst.msk [vmem:[#allocation2] sm:$0xff] %vm3407_vm11, %v3405_v34 }
 0x569   : > { %v3411_v36 = vpop.permute.xlu1 %3410 }
 0x56a   : > { %3414 = vst.msk [vmem:[#allocation2] sm:$0xff] %vm3413_vm12, %v3411_v36 }
 0x56e   : > { %v3417_v37 = vpop.permute.xlu0 %3416 }
 0x56f   : > { %3420 = vst.msk [vmem:[#allocation2] sm:$0xff] %vm3419_vm13, %v3417_v37 }
 0x571   : > { %v3423_v10 = vpop.permute.xlu1 %3422 }
 0x572   : > { %3426 = vst.msk [vmem:[#allocation2] sm:$0xff] %vm3425_vm14, %v3423_v10 }
 0x575   : > { %v3429_v40 = vpop.permute.xlu0 %3428 }
 0x576   : > { %3432 = vst.msk [vmem:[#allocation2] sm:$0xff] %vm3431_vm15, %v3429_v40 }
 0x5aa   : > { %v3435_v13 = vpop.permute.xlu1 %3434 }
 0x5ab   : > { %3438 = vst.msk [vmem:[#allocation2] sm:$0xff] %vm3437_vm0, %v3435_v13 }
 0x5b2   : > { %v3439_v29 = vld [vmem:[#allocation2] sm:$0xff] }
 0x5b3   : > { %4204 = vmatmul.mubr.f32.vlgmr.msra.gmra.mxu0 %v3439_v29 }
 0x673   : > { %v3529_v43 = vpop.f32.mrf.mxu0 }
 0x674   : > { %v3530_v39 = vadd.f32 %v3769_v3, %v3529_v43 }
 0x675   : > { %v4205_v32 = vpop.f32.mrf.mxu0 }
 0x676   : > { %3533 = vst [vmem:[%s449_s3] sm:$0xff] %v3530_v39 }
 0x677   : > { %4587 = shalt.err (!%p4584_p7)
}
 0x678   : > { %s4588_s15 = scalar_lea.hbm %s5461_s9, 128  ;;  %s4592_s20 = scalar_lea.hbm %s5506_s8, 256 }
 0x679   : > { %p4589_p3 = scmp.ne.s32.totalorder %s5461_s9, %s4588_s15  ;;  %p4593_p6 = scmp.lt.s32.totalorder %s5461_s9, %s5506_s8 }
 0x67a   : > { %p4594_p9 = scmp.lt.s32.totalorder %s4592_s20, %s4588_s15 }
 0x67b   : > { %p4590_p12 = pnand %p4589_p3, %p5557_p1 }
 0x67c   : > { %p4595_p2 = por %p4594_p9, %p4593_p6 }
 0x67d   : > { %p4591_p13 = pneg %p4590_p12 }
 0x67f   : > { %p4596_p5 = pnand %p4595_p2, %p4591_p13 }
 0x681   : > { %4599 = shalt.err (!%p4596_p5)
}
 0x682   : > { %4228 = dma.vmem_to_hbm [thread:$0]  (%p5557_p1), %s3549_s13, 128, %s5461_s9, %s3535_s24  }
 0x683 PF: > { %s5558_s18 = sld [smem:[#allocation24_spill]]  ;;  %s3560_s1 = sand.u32 1, %s4638_s27  }
 0x684   : > { %s5559_s23 = sld [smem:[#allocation21_spill]]  ;;  %s3561_s5 = scalar_lea.sflag [#allocation5], %s3560_s1 }
 0x689   : > { %p5560_p8 = scmp.ne.s32.totalorder %s5558_s18, 0 }
 0x68a   : > { %p5561_p10 = scmp.ge.s32.totalorder %s5559_s23, 2 }
 0x68c   : > { %p4254_p11 = pnand %p5561_p10, %p5560_p8 }
 0x68e   : > { %p4255_p0 = pneg %p4254_p11 }
 0x690   : > { %4633 = dma.done.wait (%p4255_p0), %s3561_s5, 128  }
 0x691   : > { %4635 = vsyncadd (%p4255_p0), %s3561_s5, 4294967168  ;;  %s5562_s30 = sld [smem:[#allocation22_spill]]  ;;  %s5564_s27 = smov %s4642_s28 }
 0x692   : > { %s5563_s12 = sld [smem:[#allocation23_spill]]  ;;  %s5565_s28 = smov %s4646_s29 }
 0x697   : > { %p26_p4 = scmp.ge.s32.totalorder %s5562_s30, 4  }
 0x698   : > { %s5566_s29 = smov %s5563_s12 }
 0x699   :  { %28 = sbr.rel (!%p26_p4) target bundleno = 14 (0xe), region = 137 }
 0x69e   :  { %3566 = vsyncpa [#allocation4], 1 }
 0x69f   :  { %3568 = vsyncpa [#allocation4 + $0x1], 1 }
 0x6a0   :  { %3569 = vsyncpa [#allocation7], 1 }
 0x6a1   :  { %3571 = vsyncpa [#allocation7 + $0x1], 1 }
 0x6a2   :  { %3572 = vsyncpa [#allocation10], 1 }
 0x6a3   :  { %3573 = vsyncpa [#allocation13], 1 }
 0x6a4   :  { %3574 = vsyncpa [#allocation5], 1 }
 0x6a5   :  { %3576 = vsyncpa [#allocation5 + $0x1], 1 }

</bundles_post_ra>
